<compile_context>
chip_gen: v7x
topology: tpu7x:2x2x1
jax: 0.10.0
libtpu: 0.0.40
codegen_flags: <defaults>
</compile_context>

<pallas_src>
import jax
import jax.numpy as jnp
from jax.experimental import pallas as pl
from jax.experimental.pallas import tpu as pltpu


# ----------------------------- kernel -------------------------------------


def make_forecast_kernel(num_layers, seq_len, output_window, hidden_size, batch):
    L, T, W, H, B = num_layers, seq_len, output_window, hidden_size, batch
    f32 = jnp.float32
    bf16 = jnp.bfloat16

    def kernel(*refs):
        # ref order:
        #   src_flat (T*B, F)  f32   (row t*B+b = timestep t, batch row b)
        #   per encoder layer l: w_ih_t (in_l, 4H) bf16, w_hh_t (H, 4H) bf16,
        #                        b (1, 4H) f32      -- gate order [i, f, o, g]
        #   per decoder layer l: same
        #   fc: w_t (H, F) bf16, b (1, F) f32
        #   out (W, B, F) f32
        idx = 0
        src_ref = refs[idx]; idx += 1
        enc = []
        for _ in range(L):
            enc.append((refs[idx], refs[idx + 1], refs[idx + 2])); idx += 3
        dec = []
        for _ in range(L):
            dec.append((refs[idx], refs[idx + 1], refs[idx + 2])); idx += 3
        wfc_ref, bfc_ref = refs[idx], refs[idx + 1]; idx += 2
        out_ref = refs[idx]

        F = src_ref.shape[-1]

        # ---- hoist every weight load / bias broadcast out of the loops ----
        enc0_wih = enc[0][0][...]                              # (F, 4H) bf16
        enc0_whh = enc[0][1][...]                              # (H, 4H) bf16
        enc0_b = enc[0][2][...]                                # (1, 4H) f32
        enc_rest = [(enc[l][0][...], enc[l][1][...],
                     jnp.broadcast_to(enc[l][2][...], (B, 4 * H)))
                    for l in range(1, L)]
        dec_w = [(dec[l][0][...], dec[l][1][...],
                  jnp.broadcast_to(dec[l][2][...], (B, 4 * H)))
                 for l in range(L)]
        wfc = wfc_ref[...]                                     # (H, F) bf16
        bfc = jnp.broadcast_to(bfc_ref[...], (B, F))           # (B, F) f32

        # Gate order (permuted wrapper-side): [i, f, o, g].
        def gates_to_hc(gates, c):
            sig = jax.nn.sigmoid(gates[:, :3 * H])     # i, f, o in one pass
            g = jnp.tanh(gates[:, 3 * H:])             # only H tanh lanes
            i = sig[:, 0 * H:1 * H]
            f = sig[:, 1 * H:2 * H]
            o = sig[:, 2 * H:3 * H]
            c_new = f * c + i * g
            h_new = o * jnp.tanh(c_new)
            return h_new, c_new

        def cell(x, params, h_prev, c_prev):
            # Two dots (no lane-axis concat); bf16 operands, f32 accumulate.
            wih, whh, b = params
            gates = (jnp.dot(x.astype(bf16), wih, preferred_element_type=f32)
                     + jnp.dot(h_prev.astype(bf16), whh,
                               preferred_element_type=f32)
                     + b)
            return gates_to_hc(gates, c_prev)

        # Zero initial states (PyTorch default when no (h0, c0) is given).
        h = [jnp.zeros((B, H), f32) for _ in range(L)]
        c = [jnp.zeros((B, H), f32) for _ in range(L)]

        # ---- encoder layer-0 input projection hoisted off the recurrence ---
        # One (T*B, F) @ (F, 4H) bf16 matmul; layer-0 bias folded in once.
        x_all = src_ref[...].astype(bf16)                       # (T*B, F)
        pre0 = jnp.dot(x_all, enc0_wih, preferred_element_type=f32) + enc0_b

        # ----- encoder: run the input sequence, keep only final (h, c) ------
        for t in range(T):
            gates = pre0[t * B:(t + 1) * B, :] + jnp.dot(
                h[0].astype(bf16), enc0_whh, preferred_element_type=f32)
            h[0], c[0] = gates_to_hc(gates, c[0])
            x = h[0]
            for l in range(1, L):
                h[l], c[l] = cell(x, enc_rest[l - 1], h[l], c[l])
                x = h[l]

        # ----- autoregressive decoder seeded with the last input step -------
        x_in = src_ref[(T - 1) * B:T * B, :]                    # (B, F) f32
        for step in range(W):
            x = x_in
            for l in range(L):
                h[l], c[l] = cell(x, dec_w[l], h[l], c[l])
                x = h[l]
            pred = (jnp.dot(x.astype(bf16), wfc, preferred_element_type=f32)
                    + bfc)
            out_ref[step] = pred.astype(out_ref.dtype)   # direct store
            x_in = pred  # feed prediction back

    return kernel


# ----------------------------- wrapper -------------------------------------


def forecast_net_pallas(src, enc_params, dec_params, fc_params, output_window):
    """src: (B, T, F). enc/dec_params: [(w_ih_t, w_hh_t, b)] per layer, PyTorch
    gate order [i,f,g,o], weights already transposed to (in, 4H)/(H, 4H) and
    biases summed to (1, 4H). fc_params: (w_t (H, F), b (1, F))."""
    B, T, F = src.shape
    H = enc_params[0][1].shape[0]  # w_hh_t is (H, 4H)
    L = len(enc_params)
    bf16 = jnp.bfloat16

    # Pad batch to a multiple of 8 f32 sublanes; flatten (T, B_pad, F) ->
    # (T*B_pad, F) so timestep t is the static row range [t*B_pad, (t+1)*B_pad).
    B_pad = ((B + 7) // 8) * 8
    src_p = jnp.transpose(src, (1, 0, 2))                       # (T, B, F)
    if B_pad != B:
        src_p = jnp.pad(src_p, ((0, 0), (0, B_pad - B), (0, 0)))
    src_flat = src_p.reshape(T * B_pad, F)

    def permute_gates(a):
        # PyTorch gate order [i, f, g, o] along 4H axis -> kernel order [i, f, o, g].
        i, f, g, o = jnp.split(a, 4, axis=-1)
        return jnp.concatenate([i, f, o, g], axis=-1)

    inputs = [src_flat]
    for (w_ih_t, w_hh_t, b) in list(enc_params) + list(dec_params):
        inputs += [permute_gates(w_ih_t).astype(bf16),
                   permute_gates(w_hh_t).astype(bf16),
                   permute_gates(b)]                    # bias stays f32
    inputs += [fc_params[0].astype(bf16), fc_params[1]]

    # Advisory cost estimate (gate-permuted kernel: 5H transcendentals/cell).
    per_step_flops = 0
    for l in range(L):
        in_l = F if l == 0 else H
        per_step_flops += 2 * B_pad * (in_l + H) * 4 * H
    flops = (T + output_window) * per_step_flops \
        + 2 * B_pad * H * F * output_window
    transcendentals = (T + output_window) * L * B_pad * 5 * H
    bytes_accessed = sum(int(a.size) * a.dtype.itemsize for a in inputs) \
        + output_window * B_pad * F * 4

    kernel = make_forecast_kernel(L, T, output_window, H, B_pad)
    out = pl.pallas_call(
        kernel,
        out_shape=jax.ShapeDtypeStruct((output_window, B_pad, F), jnp.float32),
        in_specs=[pl.BlockSpec(memory_space=pltpu.MemorySpace.VMEM)] * len(inputs),
        out_specs=pl.BlockSpec(memory_space=pltpu.MemorySpace.VMEM),
        cost_estimate=pl.CostEstimate(
            flops=flops,
            transcendentals=transcendentals,
            bytes_accessed=bytes_accessed),
    )(*inputs)

    # (W, B_pad, F) -> (B, W, F); drop padded batch rows.
    return jnp.transpose(out, (1, 0, 2))[:B]


# --------------------------- pure-JAX reference -----------------------------


def forecast_net_reference(src, enc_params, dec_params, fc_params, output_window,
                           matmul_dtype=jnp.float32):
    """PyTorch-semantics reference. matmul_dtype=bfloat16 reproduces the
    kernel's MXU operand precision (f32 accumulation, f32 elementwise)."""
    B, T, F = src.shape
    H = enc_params[0][1].shape[0]
    L = len(enc_params)

    def mm(a, w):
        return jnp.dot(a.astype(matmul_dtype), w.astype(matmul_dtype),
                       preferred_element_type=jnp.float32)

    def cell(x, h, c, w_ih_t, w_hh_t, b):
        gates = mm(x, w_ih_t) + mm(h, w_hh_t) + b
        i = jax.nn.sigmoid(gates[:, 0 * H:1 * H])
        f = jax.nn.sigmoid(gates[:, 1 * H:2 * H])
        g = jnp.tanh(gates[:, 2 * H:3 * H])
        o = jax.nn.sigmoid(gates[:, 3 * H:4 * H])
        c_new = f * c + i * g
        return o * jnp.tanh(c_new), c_new

    h = [jnp.zeros((B, H), jnp.float32) for _ in range(L)]
    c = [jnp.zeros((B, H), jnp.float32) for _ in range(L)]
    for t in range(T):
        x = src[:, t, :]
        for l in range(L):
            h[l], c[l] = cell(x, h[l], c[l], *enc_params[l])
            x = h[l]

    x_in = src[:, T - 1, :]
    preds = []
    for _ in range(output_window):
        x = x_in
        for l in range(L):
            h[l], c[l] = cell(x, h[l], c[l], *dec_params[l])
            x = h[l]
        pred = mm(x, fc_params[0]) + fc_params[1]
        preds.append(pred)
        x_in = pred
    return jnp.stack(preds, axis=1)


# ----------------------------- param init ----------------------------------


def init_lstm_params(key, num_layers, input_size, hidden_size):
    """PyTorch-style uniform(-1/sqrt(H), 1/sqrt(H)) init; weights transposed."""
    k = 1.0 / jnp.sqrt(jnp.float32(hidden_size))
    params = []
    for l in range(num_layers):
        in_l = input_size if l == 0 else hidden_size
        key, k1, k2, k3, k4 = jax.random.split(key, 5)
        w_ih = jax.random.uniform(k1, (4 * hidden_size, in_l), jnp.float32, -k, k)
        w_hh = jax.random.uniform(k2, (4 * hidden_size, hidden_size), jnp.float32, -k, k)
        b_ih = jax.random.uniform(k3, (4 * hidden_size,), jnp.float32, -k, k)
        b_hh = jax.random.uniform(k4, (4 * hidden_size,), jnp.float32, -k, k)
        params.append((w_ih.T, w_hh.T, (b_ih + b_hh).reshape(1, -1)))
    return key, params


# -------------------------------- main --------------------------------------


if __name__ == "__main__":
    # Small shapes consistent with the module's forward.
    batch = 4
    num_features = 8
    hidden_size = 32
    num_layers = 2
    seq_len = 8
    output_window = 4

    key = jax.random.PRNGKey(0)
    key, enc_params = init_lstm_params(key, num_layers, num_features, hidden_size)
    key, dec_params = init_lstm_params(key, num_layers, num_features, hidden_size)

    kfc = 1.0 / jnp.sqrt(jnp.float32(hidden_size))
    key, k1, k2, k3 = jax.random.split(key, 4)
    w_fc = jax.random.uniform(k1, (num_features, hidden_size), jnp.float32, -kfc, kfc)
    b_fc = jax.random.uniform(k2, (num_features,), jnp.float32, -kfc, kfc)
    fc_params = (w_fc.T, b_fc.reshape(1, -1))

    src = jax.random.normal(k3, (batch, seq_len, num_features), jnp.float32)

    out = forecast_net_pallas(src, enc_params, dec_params, fc_params, output_window)
    out = jax.block_until_ready(out)
    assert out.shape == (batch, output_window, num_features)

    # Tight check vs a reference with identical MXU precision (bf16 operands,
    # f32 accumulation / elementwise) -> validates the kernel implementation.
    ref_bf16 = forecast_net_reference(src, enc_params, dec_params, fc_params,
                                      output_window, matmul_dtype=jnp.bfloat16)
    assert jnp.allclose(out, ref_bf16, atol=5e-3, rtol=5e-3), \
        "mismatch vs bf16-matched JAX reference"

    # Loose check vs the full-f32 (PyTorch-semantics) reference -> validates
    # that the bf16 operand cast only introduces small numerical drift.
    ref_f32 = forecast_net_reference(src, enc_params, dec_params, fc_params,
                                     output_window, matmul_dtype=jnp.float32)
    assert jnp.allclose(out, ref_f32, atol=5e-2, rtol=5e-2), \
        "excessive drift vs f32 reference"

    print("KERNEL_OK")
</pallas_src>

<mosaic_0001>
module attributes {stable_mosaic.version = 11 : i64} {
  func.func @kernel(%arg0: memref<64x8xf32, #tpu.memory_space<vmem>>, %arg1: memref<8x128xbf16, #tpu.memory_space<vmem>>, %arg2: memref<32x128xbf16, #tpu.memory_space<vmem>>, %arg3: memref<1x128xf32, #tpu.memory_space<vmem>>, %arg4: memref<32x128xbf16, #tpu.memory_space<vmem>>, %arg5: memref<32x128xbf16, #tpu.memory_space<vmem>>, %arg6: memref<1x128xf32, #tpu.memory_space<vmem>>, %arg7: memref<8x128xbf16, #tpu.memory_space<vmem>>, %arg8: memref<32x128xbf16, #tpu.memory_space<vmem>>, %arg9: memref<1x128xf32, #tpu.memory_space<vmem>>, %arg10: memref<32x128xbf16, #tpu.memory_space<vmem>>, %arg11: memref<32x128xbf16, #tpu.memory_space<vmem>>, %arg12: memref<1x128xf32, #tpu.memory_space<vmem>>, %arg13: memref<32x8xbf16, #tpu.memory_space<vmem>>, %arg14: memref<1x8xf32, #tpu.memory_space<vmem>>, %arg15: memref<4x8x8xf32, #tpu.memory_space<vmem>>) attributes {dimension_semantics = [], scalar_prefetch = 0 : i64, scratch_operands = 0 : i64, tpu.core_type = #tpu.core_type<tc>} {
    %c0 = arith.constant 0 : index
    %c0_0 = arith.constant 0 : index
    %0 = vector.load %arg1[%c0, %c0_0] : memref<8x128xbf16, #tpu.memory_space<vmem>>, vector<8x128xbf16>
    %c0_1 = arith.constant 0 : index
    %c0_2 = arith.constant 0 : index
    %1 = vector.load %arg2[%c0_1, %c0_2] : memref<32x128xbf16, #tpu.memory_space<vmem>>, vector<32x128xbf16>
    %c0_3 = arith.constant 0 : index
    %c0_4 = arith.constant 0 : index
    %2 = vector.load %arg3[%c0_3, %c0_4] : memref<1x128xf32, #tpu.memory_space<vmem>>, vector<1x128xf32>
    %c0_5 = arith.constant 0 : index
    %c0_6 = arith.constant 0 : index
    %3 = vector.load %arg4[%c0_5, %c0_6] : memref<32x128xbf16, #tpu.memory_space<vmem>>, vector<32x128xbf16>
    %c0_7 = arith.constant 0 : index
    %c0_8 = arith.constant 0 : index
    %4 = vector.load %arg5[%c0_7, %c0_8] : memref<32x128xbf16, #tpu.memory_space<vmem>>, vector<32x128xbf16>
    %c0_9 = arith.constant 0 : index
    %c0_10 = arith.constant 0 : index
    %5 = vector.load %arg6[%c0_9, %c0_10] : memref<1x128xf32, #tpu.memory_space<vmem>>, vector<1x128xf32>
    %6 = vector.shape_cast %5 : vector<1x128xf32> to vector<1x128xf32>
    %7 = vector.broadcast %6 : vector<1x128xf32> to vector<8x128xf32>
    %c0_11 = arith.constant 0 : index
    %c0_12 = arith.constant 0 : index
    %8 = vector.load %arg7[%c0_11, %c0_12] : memref<8x128xbf16, #tpu.memory_space<vmem>>, vector<8x128xbf16>
    %c0_13 = arith.constant 0 : index
    %c0_14 = arith.constant 0 : index
    %9 = vector.load %arg8[%c0_13, %c0_14] : memref<32x128xbf16, #tpu.memory_space<vmem>>, vector<32x128xbf16>
    %c0_15 = arith.constant 0 : index
    %c0_16 = arith.constant 0 : index
    %10 = vector.load %arg9[%c0_15, %c0_16] : memref<1x128xf32, #tpu.memory_space<vmem>>, vector<1x128xf32>
    %11 = vector.shape_cast %10 : vector<1x128xf32> to vector<1x128xf32>
    %12 = vector.broadcast %11 : vector<1x128xf32> to vector<8x128xf32>
    %c0_17 = arith.constant 0 : index
    %c0_18 = arith.constant 0 : index
    %13 = vector.load %arg10[%c0_17, %c0_18] : memref<32x128xbf16, #tpu.memory_space<vmem>>, vector<32x128xbf16>
    %c0_19 = arith.constant 0 : index
    %c0_20 = arith.constant 0 : index
    %14 = vector.load %arg11[%c0_19, %c0_20] : memref<32x128xbf16, #tpu.memory_space<vmem>>, vector<32x128xbf16>
    %c0_21 = arith.constant 0 : index
    %c0_22 = arith.constant 0 : index
    %15 = vector.load %arg12[%c0_21, %c0_22] : memref<1x128xf32, #tpu.memory_space<vmem>>, vector<1x128xf32>
    %16 = vector.shape_cast %15 : vector<1x128xf32> to vector<1x128xf32>
    %17 = vector.broadcast %16 : vector<1x128xf32> to vector<8x128xf32>
    %c0_23 = arith.constant 0 : index
    %c0_24 = arith.constant 0 : index
    %18 = vector.load %arg13[%c0_23, %c0_24] : memref<32x8xbf16, #tpu.memory_space<vmem>>, vector<32x8xbf16>
    %c0_25 = arith.constant 0 : index
    %c0_26 = arith.constant 0 : index
    %19 = vector.load %arg14[%c0_25, %c0_26] : memref<1x8xf32, #tpu.memory_space<vmem>>, vector<1x8xf32>
    %20 = vector.shape_cast %19 : vector<1x8xf32> to vector<1x8xf32>
    %21 = vector.broadcast %20 : vector<1x8xf32> to vector<8x8xf32>
    %cst = arith.constant 0.000000e+00 : f32
    %22 = vector.broadcast %cst : f32 to vector<8x32xf32>
    %cst_27 = arith.constant 0.000000e+00 : f32
    %23 = vector.broadcast %cst_27 : f32 to vector<8x32xf32>
    %cst_28 = arith.constant 0.000000e+00 : f32
    %24 = vector.broadcast %cst_28 : f32 to vector<8x32xf32>
    %cst_29 = arith.constant 0.000000e+00 : f32
    %25 = vector.broadcast %cst_29 : f32 to vector<8x32xf32>
    %c0_30 = arith.constant 0 : index
    %c0_31 = arith.constant 0 : index
    %26 = vector.load %arg0[%c0_30, %c0_31] : memref<64x8xf32, #tpu.memory_space<vmem>>, vector<64x8xf32>
    %27 = arith.truncf %26 : vector<64x8xf32> to vector<64x8xbf16>
    %cst_32 = arith.constant dense<0.000000e+00> : vector<64x128xf32>
    %28 = tpu.matmul %27, %0, %cst_32 {dimension_numbers = #tpu.dot_dimension_numbers<[1], [0], [0], [1], [0, 0, 1, 1], [], []>} : vector<64x8xbf16>, vector<8x128xbf16>, vector<64x128xf32> -> vector<64x128xf32>
    %29 = vector.broadcast %2 : vector<1x128xf32> to vector<64x128xf32>
    %30 = arith.addf %28, %29 : vector<64x128xf32>
    %31 = vector.extract_strided_slice %30 {offsets = [0, 0], sizes = [8, 128], strides = [1, 1]} : vector<64x128xf32> to vector<8x128xf32>
    %32 = arith.truncf %22 : vector<8x32xf32> to vector<8x32xbf16>
    %cst_33 = arith.constant dense<0.000000e+00> : vector<8x128xf32>
    %33 = tpu.matmul %32, %1, %cst_33 {dimension_numbers = #tpu.dot_dimension_numbers<[1], [0], [0], [1], [0, 0, 1, 1], [], []>} : vector<8x32xbf16>, vector<32x128xbf16>, vector<8x128xf32> -> vector<8x128xf32>
    %34 = arith.addf %31, %33 : vector<8x128xf32>
    %35 = vector.extract_strided_slice %34 {offsets = [0, 0], sizes = [8, 96], strides = [1, 1]} : vector<8x128xf32> to vector<8x96xf32>
    %36 = arith.negf %35 : vector<8x96xf32>
    %37 = math.exp %36 : vector<8x96xf32>
    %cst_34 = arith.constant 1.000000e+00 : f32
    %38 = vector.broadcast %cst_34 : f32 to vector<8x96xf32>
    %39 = arith.addf %38, %37 : vector<8x96xf32>
    %40 = arith.divf %38, %39 : vector<8x96xf32>
    %41 = vector.extract_strided_slice %34 {offsets = [0, 96], sizes = [8, 32], strides = [1, 1]} : vector<8x128xf32> to vector<8x32xf32>
    %42 = math.tanh %41 : vector<8x32xf32>
    %43 = vector.extract_strided_slice %40 {offsets = [0, 0], sizes = [8, 32], strides = [1, 1]} : vector<8x96xf32> to vector<8x32xf32>
    %44 = vector.extract_strided_slice %40 {offsets = [0, 32], sizes = [8, 32], strides = [1, 1]} : vector<8x96xf32> to vector<8x32xf32>
    %45 = vector.extract_strided_slice %40 {offsets = [0, 64], sizes = [8, 32], strides = [1, 1]} : vector<8x96xf32> to vector<8x32xf32>
    %46 = arith.mulf %44, %24 : vector<8x32xf32>
    %47 = arith.mulf %43, %42 : vector<8x32xf32>
    %48 = arith.addf %46, %47 : vector<8x32xf32>
    %49 = math.tanh %48 : vector<8x32xf32>
    %50 = arith.mulf %45, %49 : vector<8x32xf32>
    %51 = arith.truncf %50 : vector<8x32xf32> to vector<8x32xbf16>
    %cst_35 = arith.constant dense<0.000000e+00> : vector<8x128xf32>
    %52 = tpu.matmul %51, %3, %cst_35 {dimension_numbers = #tpu.dot_dimension_numbers<[1], [0], [0], [1], [0, 0, 1, 1], [], []>} : vector<8x32xbf16>, vector<32x128xbf16>, vector<8x128xf32> -> vector<8x128xf32>
    %53 = arith.truncf %23 : vector<8x32xf32> to vector<8x32xbf16>
    %cst_36 = arith.constant dense<0.000000e+00> : vector<8x128xf32>
    %54 = tpu.matmul %53, %4, %cst_36 {dimension_numbers = #tpu.dot_dimension_numbers<[1], [0], [0], [1], [0, 0, 1, 1], [], []>} : vector<8x32xbf16>, vector<32x128xbf16>, vector<8x128xf32> -> vector<8x128xf32>
    %55 = arith.addf %52, %54 : vector<8x128xf32>
    %56 = arith.addf %55, %7 : vector<8x128xf32>
    %57 = vector.extract_strided_slice %56 {offsets = [0, 0], sizes = [8, 96], strides = [1, 1]} : vector<8x128xf32> to vector<8x96xf32>
    %58 = arith.negf %57 : vector<8x96xf32>
    %59 = math.exp %58 : vector<8x96xf32>
    %cst_37 = arith.constant 1.000000e+00 : f32
    %60 = vector.broadcast %cst_37 : f32 to vector<8x96xf32>
    %61 = arith.addf %60, %59 : vector<8x96xf32>
    %62 = arith.divf %60, %61 : vector<8x96xf32>
    %63 = vector.extract_strided_slice %56 {offsets = [0, 96], sizes = [8, 32], strides = [1, 1]} : vector<8x128xf32> to vector<8x32xf32>
    %64 = math.tanh %63 : vector<8x32xf32>
    %65 = vector.extract_strided_slice %62 {offsets = [0, 0], sizes = [8, 32], strides = [1, 1]} : vector<8x96xf32> to vector<8x32xf32>
    %66 = vector.extract_strided_slice %62 {offsets = [0, 32], sizes = [8, 32], strides = [1, 1]} : vector<8x96xf32> to vector<8x32xf32>
    %67 = vector.extract_strided_slice %62 {offsets = [0, 64], sizes = [8, 32], strides = [1, 1]} : vector<8x96xf32> to vector<8x32xf32>
    %68 = arith.mulf %66, %25 : vector<8x32xf32>
    %69 = arith.mulf %65, %64 : vector<8x32xf32>
    %70 = arith.addf %68, %69 : vector<8x32xf32>
    %71 = math.tanh %70 : vector<8x32xf32>
    %72 = arith.mulf %67, %71 : vector<8x32xf32>
    %73 = vector.extract_strided_slice %30 {offsets = [8, 0], sizes = [8, 128], strides = [1, 1]} : vector<64x128xf32> to vector<8x128xf32>
    %74 = arith.truncf %50 : vector<8x32xf32> to vector<8x32xbf16>
    %cst_38 = arith.constant dense<0.000000e+00> : vector<8x128xf32>
    %75 = tpu.matmul %74, %1, %cst_38 {dimension_numbers = #tpu.dot_dimension_numbers<[1], [0], [0], [1], [0, 0, 1, 1], [], []>} : vector<8x32xbf16>, vector<32x128xbf16>, vector<8x128xf32> -> vector<8x128xf32>
    %76 = arith.addf %73, %75 : vector<8x128xf32>
    %77 = vector.extract_strided_slice %76 {offsets = [0, 0], sizes = [8, 96], strides = [1, 1]} : vector<8x128xf32> to vector<8x96xf32>
    %78 = arith.negf %77 : vector<8x96xf32>
    %79 = math.exp %78 : vector<8x96xf32>
    %cst_39 = arith.constant 1.000000e+00 : f32
    %80 = vector.broadcast %cst_39 : f32 to vector<8x96xf32>
    %81 = arith.addf %80, %79 : vector<8x96xf32>
    %82 = arith.divf %80, %81 : vector<8x96xf32>
    %83 = vector.extract_strided_slice %76 {offsets = [0, 96], sizes = [8, 32], strides = [1, 1]} : vector<8x128xf32> to vector<8x32xf32>
    %84 = math.tanh %83 : vector<8x32xf32>
    %85 = vector.extract_strided_slice %82 {offsets = [0, 0], sizes = [8, 32], strides = [1, 1]} : vector<8x96xf32> to vector<8x32xf32>
    %86 = vector.extract_strided_slice %82 {offsets = [0, 32], sizes = [8, 32], strides = [1, 1]} : vector<8x96xf32> to vector<8x32xf32>
    %87 = vector.extract_strided_slice %82 {offsets = [0, 64], sizes = [8, 32], strides = [1, 1]} : vector<8x96xf32> to vector<8x32xf32>
    %88 = arith.mulf %86, %48 : vector<8x32xf32>
    %89 = arith.mulf %85, %84 : vector<8x32xf32>
    %90 = arith.addf %88, %89 : vector<8x32xf32>
    %91 = math.tanh %90 : vector<8x32xf32>
    %92 = arith.mulf %87, %91 : vector<8x32xf32>
    %93 = arith.truncf %92 : vector<8x32xf32> to vector<8x32xbf16>
    %cst_40 = arith.constant dense<0.000000e+00> : vector<8x128xf32>
    %94 = tpu.matmul %93, %3, %cst_40 {dimension_numbers = #tpu.dot_dimension_numbers<[1], [0], [0], [1], [0, 0, 1, 1], [], []>} : vector<8x32xbf16>, vector<32x128xbf16>, vector<8x128xf32> -> vector<8x128xf32>
    %95 = arith.truncf %72 : vector<8x32xf32> to vector<8x32xbf16>
    %cst_41 = arith.constant dense<0.000000e+00> : vector<8x128xf32>
    %96 = tpu.matmul %95, %4, %cst_41 {dimension_numbers = #tpu.dot_dimension_numbers<[1], [0], [0], [1], [0, 0, 1, 1], [], []>} : vector<8x32xbf16>, vector<32x128xbf16>, vector<8x128xf32> -> vector<8x128xf32>
    %97 = arith.addf %94, %96 : vector<8x128xf32>
    %98 = arith.addf %97, %7 : vector<8x128xf32>
    %99 = vector.extract_strided_slice %98 {offsets = [0, 0], sizes = [8, 96], strides = [1, 1]} : vector<8x128xf32> to vector<8x96xf32>
    %100 = arith.negf %99 : vector<8x96xf32>
    %101 = math.exp %100 : vector<8x96xf32>
    %cst_42 = arith.constant 1.000000e+00 : f32
    %102 = vector.broadcast %cst_42 : f32 to vector<8x96xf32>
    %103 = arith.addf %102, %101 : vector<8x96xf32>
    %104 = arith.divf %102, %103 : vector<8x96xf32>
    %105 = vector.extract_strided_slice %98 {offsets = [0, 96], sizes = [8, 32], strides = [1, 1]} : vector<8x128xf32> to vector<8x32xf32>
    %106 = math.tanh %105 : vector<8x32xf32>
    %107 = vector.extract_strided_slice %104 {offsets = [0, 0], sizes = [8, 32], strides = [1, 1]} : vector<8x96xf32> to vector<8x32xf32>
    %108 = vector.extract_strided_slice %104 {offsets = [0, 32], sizes = [8, 32], strides = [1, 1]} : vector<8x96xf32> to vector<8x32xf32>
    %109 = vector.extract_strided_slice %104 {offsets = [0, 64], sizes = [8, 32], strides = [1, 1]} : vector<8x96xf32> to vector<8x32xf32>
    %110 = arith.mulf %108, %70 : vector<8x32xf32>
    %111 = arith.mulf %107, %106 : vector<8x32xf32>
    %112 = arith.addf %110, %111 : vector<8x32xf32>
    %113 = math.tanh %112 : vector<8x32xf32>
    %114 = arith.mulf %109, %113 : vector<8x32xf32>
    %115 = vector.extract_strided_slice %30 {offsets = [16, 0], sizes = [8, 128], strides = [1, 1]} : vector<64x128xf32> to vector<8x128xf32>
    %116 = arith.truncf %92 : vector<8x32xf32> to vector<8x32xbf16>
    %cst_43 = arith.constant dense<0.000000e+00> : vector<8x128xf32>
    %117 = tpu.matmul %116, %1, %cst_43 {dimension_numbers = #tpu.dot_dimension_numbers<[1], [0], [0], [1], [0, 0, 1, 1], [], []>} : vector<8x32xbf16>, vector<32x128xbf16>, vector<8x128xf32> -> vector<8x128xf32>
    %118 = arith.addf %115, %117 : vector<8x128xf32>
    %119 = vector.extract_strided_slice %118 {offsets = [0, 0], sizes = [8, 96], strides = [1, 1]} : vector<8x128xf32> to vector<8x96xf32>
    %120 = arith.negf %119 : vector<8x96xf32>
    %121 = math.exp %120 : vector<8x96xf32>
    %cst_44 = arith.constant 1.000000e+00 : f32
    %122 = vector.broadcast %cst_44 : f32 to vector<8x96xf32>
    %123 = arith.addf %122, %121 : vector<8x96xf32>
    %124 = arith.divf %122, %123 : vector<8x96xf32>
    %125 = vector.extract_strided_slice %118 {offsets = [0, 96], sizes = [8, 32], strides = [1, 1]} : vector<8x128xf32> to vector<8x32xf32>
    %126 = math.tanh %125 : vector<8x32xf32>
    %127 = vector.extract_strided_slice %124 {offsets = [0, 0], sizes = [8, 32], strides = [1, 1]} : vector<8x96xf32> to vector<8x32xf32>
    %128 = vector.extract_strided_slice %124 {offsets = [0, 32], sizes = [8, 32], strides = [1, 1]} : vector<8x96xf32> to vector<8x32xf32>
    %129 = vector.extract_strided_slice %124 {offsets = [0, 64], sizes = [8, 32], strides = [1, 1]} : vector<8x96xf32> to vector<8x32xf32>
    %130 = arith.mulf %128, %90 : vector<8x32xf32>
    %131 = arith.mulf %127, %126 : vector<8x32xf32>
    %132 = arith.addf %130, %131 : vector<8x32xf32>
    %133 = math.tanh %132 : vector<8x32xf32>
    %134 = arith.mulf %129, %133 : vector<8x32xf32>
    %135 = arith.truncf %134 : vector<8x32xf32> to vector<8x32xbf16>
    %cst_45 = arith.constant dense<0.000000e+00> : vector<8x128xf32>
    %136 = tpu.matmul %135, %3, %cst_45 {dimension_numbers = #tpu.dot_dimension_numbers<[1], [0], [0], [1], [0, 0, 1, 1], [], []>} : vector<8x32xbf16>, vector<32x128xbf16>, vector<8x128xf32> -> vector<8x128xf32>
    %137 = arith.truncf %114 : vector<8x32xf32> to vector<8x32xbf16>
    %cst_46 = arith.constant dense<0.000000e+00> : vector<8x128xf32>
    %138 = tpu.matmul %137, %4, %cst_46 {dimension_numbers = #tpu.dot_dimension_numbers<[1], [0], [0], [1], [0, 0, 1, 1], [], []>} : vector<8x32xbf16>, vector<32x128xbf16>, vector<8x128xf32> -> vector<8x128xf32>
    %139 = arith.addf %136, %138 : vector<8x128xf32>
    %140 = arith.addf %139, %7 : vector<8x128xf32>
    %141 = vector.extract_strided_slice %140 {offsets = [0, 0], sizes = [8, 96], strides = [1, 1]} : vector<8x128xf32> to vector<8x96xf32>
    %142 = arith.negf %141 : vector<8x96xf32>
    %143 = math.exp %142 : vector<8x96xf32>
    %cst_47 = arith.constant 1.000000e+00 : f32
    %144 = vector.broadcast %cst_47 : f32 to vector<8x96xf32>
    %145 = arith.addf %144, %143 : vector<8x96xf32>
    %146 = arith.divf %144, %145 : vector<8x96xf32>
    %147 = vector.extract_strided_slice %140 {offsets = [0, 96], sizes = [8, 32], strides = [1, 1]} : vector<8x128xf32> to vector<8x32xf32>
    %148 = math.tanh %147 : vector<8x32xf32>
    %149 = vector.extract_strided_slice %146 {offsets = [0, 0], sizes = [8, 32], strides = [1, 1]} : vector<8x96xf32> to vector<8x32xf32>
    %150 = vector.extract_strided_slice %146 {offsets = [0, 32], sizes = [8, 32], strides = [1, 1]} : vector<8x96xf32> to vector<8x32xf32>
    %151 = vector.extract_strided_slice %146 {offsets = [0, 64], sizes = [8, 32], strides = [1, 1]} : vector<8x96xf32> to vector<8x32xf32>
    %152 = arith.mulf %150, %112 : vector<8x32xf32>
    %153 = arith.mulf %149, %148 : vector<8x32xf32>
    %154 = arith.addf %152, %153 : vector<8x32xf32>
    %155 = math.tanh %154 : vector<8x32xf32>
    %156 = arith.mulf %151, %155 : vector<8x32xf32>
    %157 = vector.extract_strided_slice %30 {offsets = [24, 0], sizes = [8, 128], strides = [1, 1]} : vector<64x128xf32> to vector<8x128xf32>
    %158 = arith.truncf %134 : vector<8x32xf32> to vector<8x32xbf16>
    %cst_48 = arith.constant dense<0.000000e+00> : vector<8x128xf32>
    %159 = tpu.matmul %158, %1, %cst_48 {dimension_numbers = #tpu.dot_dimension_numbers<[1], [0], [0], [1], [0, 0, 1, 1], [], []>} : vector<8x32xbf16>, vector<32x128xbf16>, vector<8x128xf32> -> vector<8x128xf32>
    %160 = arith.addf %157, %159 : vector<8x128xf32>
    %161 = vector.extract_strided_slice %160 {offsets = [0, 0], sizes = [8, 96], strides = [1, 1]} : vector<8x128xf32> to vector<8x96xf32>
    %162 = arith.negf %161 : vector<8x96xf32>
    %163 = math.exp %162 : vector<8x96xf32>
    %cst_49 = arith.constant 1.000000e+00 : f32
    %164 = vector.broadcast %cst_49 : f32 to vector<8x96xf32>
    %165 = arith.addf %164, %163 : vector<8x96xf32>
    %166 = arith.divf %164, %165 : vector<8x96xf32>
    %167 = vector.extract_strided_slice %160 {offsets = [0, 96], sizes = [8, 32], strides = [1, 1]} : vector<8x128xf32> to vector<8x32xf32>
    %168 = math.tanh %167 : vector<8x32xf32>
    %169 = vector.extract_strided_slice %166 {offsets = [0, 0], sizes = [8, 32], strides = [1, 1]} : vector<8x96xf32> to vector<8x32xf32>
    %170 = vector.extract_strided_slice %166 {offsets = [0, 32], sizes = [8, 32], strides = [1, 1]} : vector<8x96xf32> to vector<8x32xf32>
    %171 = vector.extract_strided_slice %166 {offsets = [0, 64], sizes = [8, 32], strides = [1, 1]} : vector<8x96xf32> to vector<8x32xf32>
    %172 = arith.mulf %170, %132 : vector<8x32xf32>
    %173 = arith.mulf %169, %168 : vector<8x32xf32>
    %174 = arith.addf %172, %173 : vector<8x32xf32>
    %175 = math.tanh %174 : vector<8x32xf32>
    %176 = arith.mulf %171, %175 : vector<8x32xf32>
    %177 = arith.truncf %176 : vector<8x32xf32> to vector<8x32xbf16>
    %cst_50 = arith.constant dense<0.000000e+00> : vector<8x128xf32>
    %178 = tpu.matmul %177, %3, %cst_50 {dimension_numbers = #tpu.dot_dimension_numbers<[1], [0], [0], [1], [0, 0, 1, 1], [], []>} : vector<8x32xbf16>, vector<32x128xbf16>, vector<8x128xf32> -> vector<8x128xf32>
    %179 = arith.truncf %156 : vector<8x32xf32> to vector<8x32xbf16>
    %cst_51 = arith.constant dense<0.000000e+00> : vector<8x128xf32>
    %180 = tpu.matmul %179, %4, %cst_51 {dimension_numbers = #tpu.dot_dimension_numbers<[1], [0], [0], [1], [0, 0, 1, 1], [], []>} : vector<8x32xbf16>, vector<32x128xbf16>, vector<8x128xf32> -> vector<8x128xf32>
    %181 = arith.addf %178, %180 : vector<8x128xf32>
    %182 = arith.addf %181, %7 : vector<8x128xf32>
    %183 = vector.extract_strided_slice %182 {offsets = [0, 0], sizes = [8, 96], strides = [1, 1]} : vector<8x128xf32> to vector<8x96xf32>
    %184 = arith.negf %183 : vector<8x96xf32>
    %185 = math.exp %184 : vector<8x96xf32>
    %cst_52 = arith.constant 1.000000e+00 : f32
    %186 = vector.broadcast %cst_52 : f32 to vector<8x96xf32>
    %187 = arith.addf %186, %185 : vector<8x96xf32>
    %188 = arith.divf %186, %187 : vector<8x96xf32>
    %189 = vector.extract_strided_slice %182 {offsets = [0, 96], sizes = [8, 32], strides = [1, 1]} : vector<8x128xf32> to vector<8x32xf32>
    %190 = math.tanh %189 : vector<8x32xf32>
    %191 = vector.extract_strided_slice %188 {offsets = [0, 0], sizes = [8, 32], strides = [1, 1]} : vector<8x96xf32> to vector<8x32xf32>
    %192 = vector.extract_strided_slice %188 {offsets = [0, 32], sizes = [8, 32], strides = [1, 1]} : vector<8x96xf32> to vector<8x32xf32>
    %193 = vector.extract_strided_slice %188 {offsets = [0, 64], sizes = [8, 32], strides = [1, 1]} : vector<8x96xf32> to vector<8x32xf32>
    %194 = arith.mulf %192, %154 : vector<8x32xf32>
    %195 = arith.mulf %191, %190 : vector<8x32xf32>
    %196 = arith.addf %194, %195 : vector<8x32xf32>
    %197 = math.tanh %196 : vector<8x32xf32>
    %198 = arith.mulf %193, %197 : vector<8x32xf32>
    %199 = vector.extract_strided_slice %30 {offsets = [32, 0], sizes = [8, 128], strides = [1, 1]} : vector<64x128xf32> to vector<8x128xf32>
    %200 = arith.truncf %176 : vector<8x32xf32> to vector<8x32xbf16>
    %cst_53 = arith.constant dense<0.000000e+00> : vector<8x128xf32>
    %201 = tpu.matmul %200, %1, %cst_53 {dimension_numbers = #tpu.dot_dimension_numbers<[1], [0], [0], [1], [0, 0, 1, 1], [], []>} : vector<8x32xbf16>, vector<32x128xbf16>, vector<8x128xf32> -> vector<8x128xf32>
    %202 = arith.addf %199, %201 : vector<8x128xf32>
    %203 = vector.extract_strided_slice %202 {offsets = [0, 0], sizes = [8, 96], strides = [1, 1]} : vector<8x128xf32> to vector<8x96xf32>
    %204 = arith.negf %203 : vector<8x96xf32>
    %205 = math.exp %204 : vector<8x96xf32>
    %cst_54 = arith.constant 1.000000e+00 : f32
    %206 = vector.broadcast %cst_54 : f32 to vector<8x96xf32>
    %207 = arith.addf %206, %205 : vector<8x96xf32>
    %208 = arith.divf %206, %207 : vector<8x96xf32>
    %209 = vector.extract_strided_slice %202 {offsets = [0, 96], sizes = [8, 32], strides = [1, 1]} : vector<8x128xf32> to vector<8x32xf32>
    %210 = math.tanh %209 : vector<8x32xf32>
    %211 = vector.extract_strided_slice %208 {offsets = [0, 0], sizes = [8, 32], strides = [1, 1]} : vector<8x96xf32> to vector<8x32xf32>
    %212 = vector.extract_strided_slice %208 {offsets = [0, 32], sizes = [8, 32], strides = [1, 1]} : vector<8x96xf32> to vector<8x32xf32>
    %213 = vector.extract_strided_slice %208 {offsets = [0, 64], sizes = [8, 32], strides = [1, 1]} : vector<8x96xf32> to vector<8x32xf32>
    %214 = arith.mulf %212, %174 : vector<8x32xf32>
    %215 = arith.mulf %211, %210 : vector<8x32xf32>
    %216 = arith.addf %214, %215 : vector<8x32xf32>
    %217 = math.tanh %216 : vector<8x32xf32>
    %218 = arith.mulf %213, %217 : vector<8x32xf32>
    %219 = arith.truncf %218 : vector<8x32xf32> to vector<8x32xbf16>
    %cst_55 = arith.constant dense<0.000000e+00> : vector<8x128xf32>
    %220 = tpu.matmul %219, %3, %cst_55 {dimension_numbers = #tpu.dot_dimension_numbers<[1], [0], [0], [1], [0, 0, 1, 1], [], []>} : vector<8x32xbf16>, vector<32x128xbf16>, vector<8x128xf32> -> vector<8x128xf32>
    %221 = arith.truncf %198 : vector<8x32xf32> to vector<8x32xbf16>
    %cst_56 = arith.constant dense<0.000000e+00> : vector<8x128xf32>
    %222 = tpu.matmul %221, %4, %cst_56 {dimension_numbers = #tpu.dot_dimension_numbers<[1], [0], [0], [1], [0, 0, 1, 1], [], []>} : vector<8x32xbf16>, vector<32x128xbf16>, vector<8x128xf32> -> vector<8x128xf32>
    %223 = arith.addf %220, %222 : vector<8x128xf32>
    %224 = arith.addf %223, %7 : vector<8x128xf32>
    %225 = vector.extract_strided_slice %224 {offsets = [0, 0], sizes = [8, 96], strides = [1, 1]} : vector<8x128xf32> to vector<8x96xf32>
    %226 = arith.negf %225 : vector<8x96xf32>
    %227 = math.exp %226 : vector<8x96xf32>
    %cst_57 = arith.constant 1.000000e+00 : f32
    %228 = vector.broadcast %cst_57 : f32 to vector<8x96xf32>
    %229 = arith.addf %228, %227 : vector<8x96xf32>
    %230 = arith.divf %228, %229 : vector<8x96xf32>
    %231 = vector.extract_strided_slice %224 {offsets = [0, 96], sizes = [8, 32], strides = [1, 1]} : vector<8x128xf32> to vector<8x32xf32>
    %232 = math.tanh %231 : vector<8x32xf32>
    %233 = vector.extract_strided_slice %230 {offsets = [0, 0], sizes = [8, 32], strides = [1, 1]} : vector<8x96xf32> to vector<8x32xf32>
    %234 = vector.extract_strided_slice %230 {offsets = [0, 32], sizes = [8, 32], strides = [1, 1]} : vector<8x96xf32> to vector<8x32xf32>
    %235 = vector.extract_strided_slice %230 {offsets = [0, 64], sizes = [8, 32], strides = [1, 1]} : vector<8x96xf32> to vector<8x32xf32>
    %236 = arith.mulf %234, %196 : vector<8x32xf32>
    %237 = arith.mulf %233, %232 : vector<8x32xf32>
    %238 = arith.addf %236, %237 : vector<8x32xf32>
    %239 = math.tanh %238 : vector<8x32xf32>
    %240 = arith.mulf %235, %239 : vector<8x32xf32>
    %241 = vector.extract_strided_slice %30 {offsets = [40, 0], sizes = [8, 128], strides = [1, 1]} : vector<64x128xf32> to vector<8x128xf32>
    %242 = arith.truncf %218 : vector<8x32xf32> to vector<8x32xbf16>
    %cst_58 = arith.constant dense<0.000000e+00> : vector<8x128xf32>
    %243 = tpu.matmul %242, %1, %cst_58 {dimension_numbers = #tpu.dot_dimension_numbers<[1], [0], [0], [1], [0, 0, 1, 1], [], []>} : vector<8x32xbf16>, vector<32x128xbf16>, vector<8x128xf32> -> vector<8x128xf32>
    %244 = arith.addf %241, %243 : vector<8x128xf32>
    %245 = vector.extract_strided_slice %244 {offsets = [0, 0], sizes = [8, 96], strides = [1, 1]} : vector<8x128xf32> to vector<8x96xf32>
    %246 = arith.negf %245 : vector<8x96xf32>
    %247 = math.exp %246 : vector<8x96xf32>
    %cst_59 = arith.constant 1.000000e+00 : f32
    %248 = vector.broadcast %cst_59 : f32 to vector<8x96xf32>
    %249 = arith.addf %248, %247 : vector<8x96xf32>
    %250 = arith.divf %248, %249 : vector<8x96xf32>
    %251 = vector.extract_strided_slice %244 {offsets = [0, 96], sizes = [8, 32], strides = [1, 1]} : vector<8x128xf32> to vector<8x32xf32>
    %252 = math.tanh %251 : vector<8x32xf32>
    %253 = vector.extract_strided_slice %250 {offsets = [0, 0], sizes = [8, 32], strides = [1, 1]} : vector<8x96xf32> to vector<8x32xf32>
    %254 = vector.extract_strided_slice %250 {offsets = [0, 32], sizes = [8, 32], strides = [1, 1]} : vector<8x96xf32> to vector<8x32xf32>
    %255 = vector.extract_strided_slice %250 {offsets = [0, 64], sizes = [8, 32], strides = [1, 1]} : vector<8x96xf32> to vector<8x32xf32>
    %256 = arith.mulf %254, %216 : vector<8x32xf32>
    %257 = arith.mulf %253, %252 : vector<8x32xf32>
    %258 = arith.addf %256, %257 : vector<8x32xf32>
    %259 = math.tanh %258 : vector<8x32xf32>
    %260 = arith.mulf %255, %259 : vector<8x32xf32>
    %261 = arith.truncf %260 : vector<8x32xf32> to vector<8x32xbf16>
    %cst_60 = arith.constant dense<0.000000e+00> : vector<8x128xf32>
    %262 = tpu.matmul %261, %3, %cst_60 {dimension_numbers = #tpu.dot_dimension_numbers<[1], [0], [0], [1], [0, 0, 1, 1], [], []>} : vector<8x32xbf16>, vector<32x128xbf16>, vector<8x128xf32> -> vector<8x128xf32>
    %263 = arith.truncf %240 : vector<8x32xf32> to vector<8x32xbf16>
    %cst_61 = arith.constant dense<0.000000e+00> : vector<8x128xf32>
    %264 = tpu.matmul %263, %4, %cst_61 {dimension_numbers = #tpu.dot_dimension_numbers<[1], [0], [0], [1], [0, 0, 1, 1], [], []>} : vector<8x32xbf16>, vector<32x128xbf16>, vector<8x128xf32> -> vector<8x128xf32>
    %265 = arith.addf %262, %264 : vector<8x128xf32>
    %266 = arith.addf %265, %7 : vector<8x128xf32>
    %267 = vector.extract_strided_slice %266 {offsets = [0, 0], sizes = [8, 96], strides = [1, 1]} : vector<8x128xf32> to vector<8x96xf32>
    %268 = arith.negf %267 : vector<8x96xf32>
    %269 = math.exp %268 : vector<8x96xf32>
    %cst_62 = arith.constant 1.000000e+00 : f32
    %270 = vector.broadcast %cst_62 : f32 to vector<8x96xf32>
    %271 = arith.addf %270, %269 : vector<8x96xf32>
    %272 = arith.divf %270, %271 : vector<8x96xf32>
    %273 = vector.extract_strided_slice %266 {offsets = [0, 96], sizes = [8, 32], strides = [1, 1]} : vector<8x128xf32> to vector<8x32xf32>
    %274 = math.tanh %273 : vector<8x32xf32>
    %275 = vector.extract_strided_slice %272 {offsets = [0, 0], sizes = [8, 32], strides = [1, 1]} : vector<8x96xf32> to vector<8x32xf32>
    %276 = vector.extract_strided_slice %272 {offsets = [0, 32], sizes = [8, 32], strides = [1, 1]} : vector<8x96xf32> to vector<8x32xf32>
    %277 = vector.extract_strided_slice %272 {offsets = [0, 64], sizes = [8, 32], strides = [1, 1]} : vector<8x96xf32> to vector<8x32xf32>
    %278 = arith.mulf %276, %238 : vector<8x32xf32>
    %279 = arith.mulf %275, %274 : vector<8x32xf32>
    %280 = arith.addf %278, %279 : vector<8x32xf32>
    %281 = math.tanh %280 : vector<8x32xf32>
    %282 = arith.mulf %277, %281 : vector<8x32xf32>
    %283 = vector.extract_strided_slice %30 {offsets = [48, 0], sizes = [8, 128], strides = [1, 1]} : vector<64x128xf32> to vector<8x128xf32>
    %284 = arith.truncf %260 : vector<8x32xf32> to vector<8x32xbf16>
    %cst_63 = arith.constant dense<0.000000e+00> : vector<8x128xf32>
    %285 = tpu.matmul %284, %1, %cst_63 {dimension_numbers = #tpu.dot_dimension_numbers<[1], [0], [0], [1], [0, 0, 1, 1], [], []>} : vector<8x32xbf16>, vector<32x128xbf16>, vector<8x128xf32> -> vector<8x128xf32>
    %286 = arith.addf %283, %285 : vector<8x128xf32>
    %287 = vector.extract_strided_slice %286 {offsets = [0, 0], sizes = [8, 96], strides = [1, 1]} : vector<8x128xf32> to vector<8x96xf32>
    %288 = arith.negf %287 : vector<8x96xf32>
    %289 = math.exp %288 : vector<8x96xf32>
    %cst_64 = arith.constant 1.000000e+00 : f32
    %290 = vector.broadcast %cst_64 : f32 to vector<8x96xf32>
    %291 = arith.addf %290, %289 : vector<8x96xf32>
    %292 = arith.divf %290, %291 : vector<8x96xf32>
    %293 = vector.extract_strided_slice %286 {offsets = [0, 96], sizes = [8, 32], strides = [1, 1]} : vector<8x128xf32> to vector<8x32xf32>
    %294 = math.tanh %293 : vector<8x32xf32>
    %295 = vector.extract_strided_slice %292 {offsets = [0, 0], sizes = [8, 32], strides = [1, 1]} : vector<8x96xf32> to vector<8x32xf32>
    %296 = vector.extract_strided_slice %292 {offsets = [0, 32], sizes = [8, 32], strides = [1, 1]} : vector<8x96xf32> to vector<8x32xf32>
    %297 = vector.extract_strided_slice %292 {offsets = [0, 64], sizes = [8, 32], strides = [1, 1]} : vector<8x96xf32> to vector<8x32xf32>
    %298 = arith.mulf %296, %258 : vector<8x32xf32>
    %299 = arith.mulf %295, %294 : vector<8x32xf32>
    %300 = arith.addf %298, %299 : vector<8x32xf32>
    %301 = math.tanh %300 : vector<8x32xf32>
    %302 = arith.mulf %297, %301 : vector<8x32xf32>
    %303 = arith.truncf %302 : vector<8x32xf32> to vector<8x32xbf16>
    %cst_65 = arith.constant dense<0.000000e+00> : vector<8x128xf32>
    %304 = tpu.matmul %303, %3, %cst_65 {dimension_numbers = #tpu.dot_dimension_numbers<[1], [0], [0], [1], [0, 0, 1, 1], [], []>} : vector<8x32xbf16>, vector<32x128xbf16>, vector<8x128xf32> -> vector<8x128xf32>
    %305 = arith.truncf %282 : vector<8x32xf32> to vector<8x32xbf16>
    %cst_66 = arith.constant dense<0.000000e+00> : vector<8x128xf32>
    %306 = tpu.matmul %305, %4, %cst_66 {dimension_numbers = #tpu.dot_dimension_numbers<[1], [0], [0], [1], [0, 0, 1, 1], [], []>} : vector<8x32xbf16>, vector<32x128xbf16>, vector<8x128xf32> -> vector<8x128xf32>
    %307 = arith.addf %304, %306 : vector<8x128xf32>
    %308 = arith.addf %307, %7 : vector<8x128xf32>
    %309 = vector.extract_strided_slice %308 {offsets = [0, 0], sizes = [8, 96], strides = [1, 1]} : vector<8x128xf32> to vector<8x96xf32>
    %310 = arith.negf %309 : vector<8x96xf32>
    %311 = math.exp %310 : vector<8x96xf32>
    %cst_67 = arith.constant 1.000000e+00 : f32
    %312 = vector.broadcast %cst_67 : f32 to vector<8x96xf32>
    %313 = arith.addf %312, %311 : vector<8x96xf32>
    %314 = arith.divf %312, %313 : vector<8x96xf32>
    %315 = vector.extract_strided_slice %308 {offsets = [0, 96], sizes = [8, 32], strides = [1, 1]} : vector<8x128xf32> to vector<8x32xf32>
    %316 = math.tanh %315 : vector<8x32xf32>
    %317 = vector.extract_strided_slice %314 {offsets = [0, 0], sizes = [8, 32], strides = [1, 1]} : vector<8x96xf32> to vector<8x32xf32>
    %318 = vector.extract_strided_slice %314 {offsets = [0, 32], sizes = [8, 32], strides = [1, 1]} : vector<8x96xf32> to vector<8x32xf32>
    %319 = vector.extract_strided_slice %314 {offsets = [0, 64], sizes = [8, 32], strides = [1, 1]} : vector<8x96xf32> to vector<8x32xf32>
    %320 = arith.mulf %318, %280 : vector<8x32xf32>
    %321 = arith.mulf %317, %316 : vector<8x32xf32>
    %322 = arith.addf %320, %321 : vector<8x32xf32>
    %323 = math.tanh %322 : vector<8x32xf32>
    %324 = arith.mulf %319, %323 : vector<8x32xf32>
    %325 = vector.extract_strided_slice %30 {offsets = [56, 0], sizes = [8, 128], strides = [1, 1]} : vector<64x128xf32> to vector<8x128xf32>
    %326 = arith.truncf %302 : vector<8x32xf32> to vector<8x32xbf16>
    %cst_68 = arith.constant dense<0.000000e+00> : vector<8x128xf32>
    %327 = tpu.matmul %326, %1, %cst_68 {dimension_numbers = #tpu.dot_dimension_numbers<[1], [0], [0], [1], [0, 0, 1, 1], [], []>} : vector<8x32xbf16>, vector<32x128xbf16>, vector<8x128xf32> -> vector<8x128xf32>
    %328 = arith.addf %325, %327 : vector<8x128xf32>
    %329 = vector.extract_strided_slice %328 {offsets = [0, 0], sizes = [8, 96], strides = [1, 1]} : vector<8x128xf32> to vector<8x96xf32>
    %330 = arith.negf %329 : vector<8x96xf32>
    %331 = math.exp %330 : vector<8x96xf32>
    %cst_69 = arith.constant 1.000000e+00 : f32
    %332 = vector.broadcast %cst_69 : f32 to vector<8x96xf32>
    %333 = arith.addf %332, %331 : vector<8x96xf32>
    %334 = arith.divf %332, %333 : vector<8x96xf32>
    %335 = vector.extract_strided_slice %328 {offsets = [0, 96], sizes = [8, 32], strides = [1, 1]} : vector<8x128xf32> to vector<8x32xf32>
    %336 = math.tanh %335 : vector<8x32xf32>
    %337 = vector.extract_strided_slice %334 {offsets = [0, 0], sizes = [8, 32], strides = [1, 1]} : vector<8x96xf32> to vector<8x32xf32>
    %338 = vector.extract_strided_slice %334 {offsets = [0, 32], sizes = [8, 32], strides = [1, 1]} : vector<8x96xf32> to vector<8x32xf32>
    %339 = vector.extract_strided_slice %334 {offsets = [0, 64], sizes = [8, 32], strides = [1, 1]} : vector<8x96xf32> to vector<8x32xf32>
    %340 = arith.mulf %338, %300 : vector<8x32xf32>
    %341 = arith.mulf %337, %336 : vector<8x32xf32>
    %342 = arith.addf %340, %341 : vector<8x32xf32>
    %343 = math.tanh %342 : vector<8x32xf32>
    %344 = arith.mulf %339, %343 : vector<8x32xf32>
    %345 = arith.truncf %344 : vector<8x32xf32> to vector<8x32xbf16>
    %cst_70 = arith.constant dense<0.000000e+00> : vector<8x128xf32>
    %346 = tpu.matmul %345, %3, %cst_70 {dimension_numbers = #tpu.dot_dimension_numbers<[1], [0], [0], [1], [0, 0, 1, 1], [], []>} : vector<8x32xbf16>, vector<32x128xbf16>, vector<8x128xf32> -> vector<8x128xf32>
    %347 = arith.truncf %324 : vector<8x32xf32> to vector<8x32xbf16>
    %cst_71 = arith.constant dense<0.000000e+00> : vector<8x128xf32>
    %348 = tpu.matmul %347, %4, %cst_71 {dimension_numbers = #tpu.dot_dimension_numbers<[1], [0], [0], [1], [0, 0, 1, 1], [], []>} : vector<8x32xbf16>, vector<32x128xbf16>, vector<8x128xf32> -> vector<8x128xf32>
    %349 = arith.addf %346, %348 : vector<8x128xf32>
    %350 = arith.addf %349, %7 : vector<8x128xf32>
    %351 = vector.extract_strided_slice %350 {offsets = [0, 0], sizes = [8, 96], strides = [1, 1]} : vector<8x128xf32> to vector<8x96xf32>
    %352 = arith.negf %351 : vector<8x96xf32>
    %353 = math.exp %352 : vector<8x96xf32>
    %cst_72 = arith.constant 1.000000e+00 : f32
    %354 = vector.broadcast %cst_72 : f32 to vector<8x96xf32>
    %355 = arith.addf %354, %353 : vector<8x96xf32>
    %356 = arith.divf %354, %355 : vector<8x96xf32>
    %357 = vector.extract_strided_slice %350 {offsets = [0, 96], sizes = [8, 32], strides = [1, 1]} : vector<8x128xf32> to vector<8x32xf32>
    %358 = math.tanh %357 : vector<8x32xf32>
    %359 = vector.extract_strided_slice %356 {offsets = [0, 0], sizes = [8, 32], strides = [1, 1]} : vector<8x96xf32> to vector<8x32xf32>
    %360 = vector.extract_strided_slice %356 {offsets = [0, 32], sizes = [8, 32], strides = [1, 1]} : vector<8x96xf32> to vector<8x32xf32>
    %361 = vector.extract_strided_slice %356 {offsets = [0, 64], sizes = [8, 32], strides = [1, 1]} : vector<8x96xf32> to vector<8x32xf32>
    %362 = arith.mulf %360, %322 : vector<8x32xf32>
    %363 = arith.mulf %359, %358 : vector<8x32xf32>
    %364 = arith.addf %362, %363 : vector<8x32xf32>
    %365 = math.tanh %364 : vector<8x32xf32>
    %366 = arith.mulf %361, %365 : vector<8x32xf32>
    %c56 = arith.constant 56 : index
    %c0_73 = arith.constant 0 : index
    %367 = vector.load %arg0[%c56, %c0_73] : memref<64x8xf32, #tpu.memory_space<vmem>>, vector<8x8xf32>
    %368 = arith.truncf %367 : vector<8x8xf32> to vector<8x8xbf16>
    %cst_74 = arith.constant dense<0.000000e+00> : vector<8x128xf32>
    %369 = tpu.matmul %368, %8, %cst_74 {dimension_numbers = #tpu.dot_dimension_numbers<[1], [0], [0], [1], [0, 0, 1, 1], [], []>} : vector<8x8xbf16>, vector<8x128xbf16>, vector<8x128xf32> -> vector<8x128xf32>
    %370 = arith.truncf %344 : vector<8x32xf32> to vector<8x32xbf16>
    %cst_75 = arith.constant dense<0.000000e+00> : vector<8x128xf32>
    %371 = tpu.matmul %370, %9, %cst_75 {dimension_numbers = #tpu.dot_dimension_numbers<[1], [0], [0], [1], [0, 0, 1, 1], [], []>} : vector<8x32xbf16>, vector<32x128xbf16>, vector<8x128xf32> -> vector<8x128xf32>
    %372 = arith.addf %369, %371 : vector<8x128xf32>
    %373 = arith.addf %372, %12 : vector<8x128xf32>
    %374 = vector.extract_strided_slice %373 {offsets = [0, 0], sizes = [8, 96], strides = [1, 1]} : vector<8x128xf32> to vector<8x96xf32>
    %375 = arith.negf %374 : vector<8x96xf32>
    %376 = math.exp %375 : vector<8x96xf32>
    %cst_76 = arith.constant 1.000000e+00 : f32
    %377 = vector.broadcast %cst_76 : f32 to vector<8x96xf32>
    %378 = arith.addf %377, %376 : vector<8x96xf32>
    %379 = arith.divf %377, %378 : vector<8x96xf32>
    %380 = vector.extract_strided_slice %373 {offsets = [0, 96], sizes = [8, 32], strides = [1, 1]} : vector<8x128xf32> to vector<8x32xf32>
    %381 = math.tanh %380 : vector<8x32xf32>
    %382 = vector.extract_strided_slice %379 {offsets = [0, 0], sizes = [8, 32], strides = [1, 1]} : vector<8x96xf32> to vector<8x32xf32>
    %383 = vector.extract_strided_slice %379 {offsets = [0, 32], sizes = [8, 32], strides = [1, 1]} : vector<8x96xf32> to vector<8x32xf32>
    %384 = vector.extract_strided_slice %379 {offsets = [0, 64], sizes = [8, 32], strides = [1, 1]} : vector<8x96xf32> to vector<8x32xf32>
    %385 = arith.mulf %383, %342 : vector<8x32xf32>
    %386 = arith.mulf %382, %381 : vector<8x32xf32>
    %387 = arith.addf %385, %386 : vector<8x32xf32>
    %388 = math.tanh %387 : vector<8x32xf32>
    %389 = arith.mulf %384, %388 : vector<8x32xf32>
    %390 = arith.truncf %389 : vector<8x32xf32> to vector<8x32xbf16>
    %cst_77 = arith.constant dense<0.000000e+00> : vector<8x128xf32>
    %391 = tpu.matmul %390, %13, %cst_77 {dimension_numbers = #tpu.dot_dimension_numbers<[1], [0], [0], [1], [0, 0, 1, 1], [], []>} : vector<8x32xbf16>, vector<32x128xbf16>, vector<8x128xf32> -> vector<8x128xf32>
    %392 = arith.truncf %366 : vector<8x32xf32> to vector<8x32xbf16>
    %cst_78 = arith.constant dense<0.000000e+00> : vector<8x128xf32>
    %393 = tpu.matmul %392, %14, %cst_78 {dimension_numbers = #tpu.dot_dimension_numbers<[1], [0], [0], [1], [0, 0, 1, 1], [], []>} : vector<8x32xbf16>, vector<32x128xbf16>, vector<8x128xf32> -> vector<8x128xf32>
    %394 = arith.addf %391, %393 : vector<8x128xf32>
    %395 = arith.addf %394, %17 : vector<8x128xf32>
    %396 = vector.extract_strided_slice %395 {offsets = [0, 0], sizes = [8, 96], strides = [1, 1]} : vector<8x128xf32> to vector<8x96xf32>
    %397 = arith.negf %396 : vector<8x96xf32>
    %398 = math.exp %397 : vector<8x96xf32>
    %cst_79 = arith.constant 1.000000e+00 : f32
    %399 = vector.broadcast %cst_79 : f32 to vector<8x96xf32>
    %400 = arith.addf %399, %398 : vector<8x96xf32>
    %401 = arith.divf %399, %400 : vector<8x96xf32>
    %402 = vector.extract_strided_slice %395 {offsets = [0, 96], sizes = [8, 32], strides = [1, 1]} : vector<8x128xf32> to vector<8x32xf32>
    %403 = math.tanh %402 : vector<8x32xf32>
    %404 = vector.extract_strided_slice %401 {offsets = [0, 0], sizes = [8, 32], strides = [1, 1]} : vector<8x96xf32> to vector<8x32xf32>
    %405 = vector.extract_strided_slice %401 {offsets = [0, 32], sizes = [8, 32], strides = [1, 1]} : vector<8x96xf32> to vector<8x32xf32>
    %406 = vector.extract_strided_slice %401 {offsets = [0, 64], sizes = [8, 32], strides = [1, 1]} : vector<8x96xf32> to vector<8x32xf32>
    %407 = arith.mulf %405, %364 : vector<8x32xf32>
    %408 = arith.mulf %404, %403 : vector<8x32xf32>
    %409 = arith.addf %407, %408 : vector<8x32xf32>
    %410 = math.tanh %409 : vector<8x32xf32>
    %411 = arith.mulf %406, %410 : vector<8x32xf32>
    %412 = arith.truncf %411 : vector<8x32xf32> to vector<8x32xbf16>
    %cst_80 = arith.constant dense<0.000000e+00> : vector<8x8xf32>
    %413 = tpu.matmul %412, %18, %cst_80 {dimension_numbers = #tpu.dot_dimension_numbers<[1], [0], [0], [1], [0, 0, 1, 1], [], []>} : vector<8x32xbf16>, vector<32x8xbf16>, vector<8x8xf32> -> vector<8x8xf32>
    %414 = arith.addf %413, %21 : vector<8x8xf32>
    %c0_81 = arith.constant 0 : index
    %c0_82 = arith.constant 0 : index
    %c0_83 = arith.constant 0 : index
    %415 = vector.load %arg15[%c0_81, %c0_82, %c0_83] : memref<4x8x8xf32, #tpu.memory_space<vmem>>, vector<1x8x8xf32>
    %416 = vector.shape_cast %415 : vector<1x8x8xf32> to vector<8x8xf32>
    %417 = vector.shape_cast %414 : vector<8x8xf32> to vector<1x8x8xf32>
    tpu.vector_store %arg15[%c0_81, %c0_82, %c0_83], %417 {strides = array<i32>} : memref<4x8x8xf32, #tpu.memory_space<vmem>>, vector<1x8x8xf32>,
    %418 = arith.truncf %414 : vector<8x8xf32> to vector<8x8xbf16>
    %cst_84 = arith.constant dense<0.000000e+00> : vector<8x128xf32>
    %419 = tpu.matmul %418, %8, %cst_84 {dimension_numbers = #tpu.dot_dimension_numbers<[1], [0], [0], [1], [0, 0, 1, 1], [], []>} : vector<8x8xbf16>, vector<8x128xbf16>, vector<8x128xf32> -> vector<8x128xf32>
    %420 = arith.truncf %389 : vector<8x32xf32> to vector<8x32xbf16>
    %cst_85 = arith.constant dense<0.000000e+00> : vector<8x128xf32>
    %421 = tpu.matmul %420, %9, %cst_85 {dimension_numbers = #tpu.dot_dimension_numbers<[1], [0], [0], [1], [0, 0, 1, 1], [], []>} : vector<8x32xbf16>, vector<32x128xbf16>, vector<8x128xf32> -> vector<8x128xf32>
    %422 = arith.addf %419, %421 : vector<8x128xf32>
    %423 = arith.addf %422, %12 : vector<8x128xf32>
    %424 = vector.extract_strided_slice %423 {offsets = [0, 0], sizes = [8, 96], strides = [1, 1]} : vector<8x128xf32> to vector<8x96xf32>
    %425 = arith.negf %424 : vector<8x96xf32>
    %426 = math.exp %425 : vector<8x96xf32>
    %cst_86 = arith.constant 1.000000e+00 : f32
    %427 = vector.broadcast %cst_86 : f32 to vector<8x96xf32>
    %428 = arith.addf %427, %426 : vector<8x96xf32>
    %429 = arith.divf %427, %428 : vector<8x96xf32>
    %430 = vector.extract_strided_slice %423 {offsets = [0, 96], sizes = [8, 32], strides = [1, 1]} : vector<8x128xf32> to vector<8x32xf32>
    %431 = math.tanh %430 : vector<8x32xf32>
    %432 = vector.extract_strided_slice %429 {offsets = [0, 0], sizes = [8, 32], strides = [1, 1]} : vector<8x96xf32> to vector<8x32xf32>
    %433 = vector.extract_strided_slice %429 {offsets = [0, 32], sizes = [8, 32], strides = [1, 1]} : vector<8x96xf32> to vector<8x32xf32>
    %434 = vector.extract_strided_slice %429 {offsets = [0, 64], sizes = [8, 32], strides = [1, 1]} : vector<8x96xf32> to vector<8x32xf32>
    %435 = arith.mulf %433, %387 : vector<8x32xf32>
    %436 = arith.mulf %432, %431 : vector<8x32xf32>
    %437 = arith.addf %435, %436 : vector<8x32xf32>
    %438 = math.tanh %437 : vector<8x32xf32>
    %439 = arith.mulf %434, %438 : vector<8x32xf32>
    %440 = arith.truncf %439 : vector<8x32xf32> to vector<8x32xbf16>
    %cst_87 = arith.constant dense<0.000000e+00> : vector<8x128xf32>
    %441 = tpu.matmul %440, %13, %cst_87 {dimension_numbers = #tpu.dot_dimension_numbers<[1], [0], [0], [1], [0, 0, 1, 1], [], []>} : vector<8x32xbf16>, vector<32x128xbf16>, vector<8x128xf32> -> vector<8x128xf32>
    %442 = arith.truncf %411 : vector<8x32xf32> to vector<8x32xbf16>
    %cst_88 = arith.constant dense<0.000000e+00> : vector<8x128xf32>
    %443 = tpu.matmul %442, %14, %cst_88 {dimension_numbers = #tpu.dot_dimension_numbers<[1], [0], [0], [1], [0, 0, 1, 1], [], []>} : vector<8x32xbf16>, vector<32x128xbf16>, vector<8x128xf32> -> vector<8x128xf32>
    %444 = arith.addf %441, %443 : vector<8x128xf32>
    %445 = arith.addf %444, %17 : vector<8x128xf32>
    %446 = vector.extract_strided_slice %445 {offsets = [0, 0], sizes = [8, 96], strides = [1, 1]} : vector<8x128xf32> to vector<8x96xf32>
    %447 = arith.negf %446 : vector<8x96xf32>
    %448 = math.exp %447 : vector<8x96xf32>
    %cst_89 = arith.constant 1.000000e+00 : f32
    %449 = vector.broadcast %cst_89 : f32 to vector<8x96xf32>
    %450 = arith.addf %449, %448 : vector<8x96xf32>
    %451 = arith.divf %449, %450 : vector<8x96xf32>
    %452 = vector.extract_strided_slice %445 {offsets = [0, 96], sizes = [8, 32], strides = [1, 1]} : vector<8x128xf32> to vector<8x32xf32>
    %453 = math.tanh %452 : vector<8x32xf32>
    %454 = vector.extract_strided_slice %451 {offsets = [0, 0], sizes = [8, 32], strides = [1, 1]} : vector<8x96xf32> to vector<8x32xf32>
    %455 = vector.extract_strided_slice %451 {offsets = [0, 32], sizes = [8, 32], strides = [1, 1]} : vector<8x96xf32> to vector<8x32xf32>
    %456 = vector.extract_strided_slice %451 {offsets = [0, 64], sizes = [8, 32], strides = [1, 1]} : vector<8x96xf32> to vector<8x32xf32>
    %457 = arith.mulf %455, %409 : vector<8x32xf32>
    %458 = arith.mulf %454, %453 : vector<8x32xf32>
    %459 = arith.addf %457, %458 : vector<8x32xf32>
    %460 = math.tanh %459 : vector<8x32xf32>
    %461 = arith.mulf %456, %460 : vector<8x32xf32>
    %462 = arith.truncf %461 : vector<8x32xf32> to vector<8x32xbf16>
    %cst_90 = arith.constant dense<0.000000e+00> : vector<8x8xf32>
    %463 = tpu.matmul %462, %18, %cst_90 {dimension_numbers = #tpu.dot_dimension_numbers<[1], [0], [0], [1], [0, 0, 1, 1], [], []>} : vector<8x32xbf16>, vector<32x8xbf16>, vector<8x8xf32> -> vector<8x8xf32>
    %464 = arith.addf %463, %21 : vector<8x8xf32>
    %c1 = arith.constant 1 : index
    %c0_91 = arith.constant 0 : index
    %c0_92 = arith.constant 0 : index
    %465 = vector.load %arg15[%c1, %c0_91, %c0_92] : memref<4x8x8xf32, #tpu.memory_space<vmem>>, vector<1x8x8xf32>
    %466 = vector.shape_cast %465 : vector<1x8x8xf32> to vector<8x8xf32>
    %467 = vector.shape_cast %464 : vector<8x8xf32> to vector<1x8x8xf32>
    tpu.vector_store %arg15[%c1, %c0_91, %c0_92], %467 {strides = array<i32>} : memref<4x8x8xf32, #tpu.memory_space<vmem>>, vector<1x8x8xf32>,
    %468 = arith.truncf %464 : vector<8x8xf32> to vector<8x8xbf16>
    %cst_93 = arith.constant dense<0.000000e+00> : vector<8x128xf32>
    %469 = tpu.matmul %468, %8, %cst_93 {dimension_numbers = #tpu.dot_dimension_numbers<[1], [0], [0], [1], [0, 0, 1, 1], [], []>} : vector<8x8xbf16>, vector<8x128xbf16>, vector<8x128xf32> -> vector<8x128xf32>
    %470 = arith.truncf %439 : vector<8x32xf32> to vector<8x32xbf16>
    %cst_94 = arith.constant dense<0.000000e+00> : vector<8x128xf32>
    %471 = tpu.matmul %470, %9, %cst_94 {dimension_numbers = #tpu.dot_dimension_numbers<[1], [0], [0], [1], [0, 0, 1, 1], [], []>} : vector<8x32xbf16>, vector<32x128xbf16>, vector<8x128xf32> -> vector<8x128xf32>
    %472 = arith.addf %469, %471 : vector<8x128xf32>
    %473 = arith.addf %472, %12 : vector<8x128xf32>
    %474 = vector.extract_strided_slice %473 {offsets = [0, 0], sizes = [8, 96], strides = [1, 1]} : vector<8x128xf32> to vector<8x96xf32>
    %475 = arith.negf %474 : vector<8x96xf32>
    %476 = math.exp %475 : vector<8x96xf32>
    %cst_95 = arith.constant 1.000000e+00 : f32
    %477 = vector.broadcast %cst_95 : f32 to vector<8x96xf32>
    %478 = arith.addf %477, %476 : vector<8x96xf32>
    %479 = arith.divf %477, %478 : vector<8x96xf32>
    %480 = vector.extract_strided_slice %473 {offsets = [0, 96], sizes = [8, 32], strides = [1, 1]} : vector<8x128xf32> to vector<8x32xf32>
    %481 = math.tanh %480 : vector<8x32xf32>
    %482 = vector.extract_strided_slice %479 {offsets = [0, 0], sizes = [8, 32], strides = [1, 1]} : vector<8x96xf32> to vector<8x32xf32>
    %483 = vector.extract_strided_slice %479 {offsets = [0, 32], sizes = [8, 32], strides = [1, 1]} : vector<8x96xf32> to vector<8x32xf32>
    %484 = vector.extract_strided_slice %479 {offsets = [0, 64], sizes = [8, 32], strides = [1, 1]} : vector<8x96xf32> to vector<8x32xf32>
    %485 = arith.mulf %483, %437 : vector<8x32xf32>
    %486 = arith.mulf %482, %481 : vector<8x32xf32>
    %487 = arith.addf %485, %486 : vector<8x32xf32>
    %488 = math.tanh %487 : vector<8x32xf32>
    %489 = arith.mulf %484, %488 : vector<8x32xf32>
    %490 = arith.truncf %489 : vector<8x32xf32> to vector<8x32xbf16>
    %cst_96 = arith.constant dense<0.000000e+00> : vector<8x128xf32>
    %491 = tpu.matmul %490, %13, %cst_96 {dimension_numbers = #tpu.dot_dimension_numbers<[1], [0], [0], [1], [0, 0, 1, 1], [], []>} : vector<8x32xbf16>, vector<32x128xbf16>, vector<8x128xf32> -> vector<8x128xf32>
    %492 = arith.truncf %461 : vector<8x32xf32> to vector<8x32xbf16>
    %cst_97 = arith.constant dense<0.000000e+00> : vector<8x128xf32>
    %493 = tpu.matmul %492, %14, %cst_97 {dimension_numbers = #tpu.dot_dimension_numbers<[1], [0], [0], [1], [0, 0, 1, 1], [], []>} : vector<8x32xbf16>, vector<32x128xbf16>, vector<8x128xf32> -> vector<8x128xf32>
    %494 = arith.addf %491, %493 : vector<8x128xf32>
    %495 = arith.addf %494, %17 : vector<8x128xf32>
    %496 = vector.extract_strided_slice %495 {offsets = [0, 0], sizes = [8, 96], strides = [1, 1]} : vector<8x128xf32> to vector<8x96xf32>
    %497 = arith.negf %496 : vector<8x96xf32>
    %498 = math.exp %497 : vector<8x96xf32>
    %cst_98 = arith.constant 1.000000e+00 : f32
    %499 = vector.broadcast %cst_98 : f32 to vector<8x96xf32>
    %500 = arith.addf %499, %498 : vector<8x96xf32>
    %501 = arith.divf %499, %500 : vector<8x96xf32>
    %502 = vector.extract_strided_slice %495 {offsets = [0, 96], sizes = [8, 32], strides = [1, 1]} : vector<8x128xf32> to vector<8x32xf32>
    %503 = math.tanh %502 : vector<8x32xf32>
    %504 = vector.extract_strided_slice %501 {offsets = [0, 0], sizes = [8, 32], strides = [1, 1]} : vector<8x96xf32> to vector<8x32xf32>
    %505 = vector.extract_strided_slice %501 {offsets = [0, 32], sizes = [8, 32], strides = [1, 1]} : vector<8x96xf32> to vector<8x32xf32>
    %506 = vector.extract_strided_slice %501 {offsets = [0, 64], sizes = [8, 32], strides = [1, 1]} : vector<8x96xf32> to vector<8x32xf32>
    %507 = arith.mulf %505, %459 : vector<8x32xf32>
    %508 = arith.mulf %504, %503 : vector<8x32xf32>
    %509 = arith.addf %507, %508 : vector<8x32xf32>
    %510 = math.tanh %509 : vector<8x32xf32>
    %511 = arith.mulf %506, %510 : vector<8x32xf32>
    %512 = arith.truncf %511 : vector<8x32xf32> to vector<8x32xbf16>
    %cst_99 = arith.constant dense<0.000000e+00> : vector<8x8xf32>
    %513 = tpu.matmul %512, %18, %cst_99 {dimension_numbers = #tpu.dot_dimension_numbers<[1], [0], [0], [1], [0, 0, 1, 1], [], []>} : vector<8x32xbf16>, vector<32x8xbf16>, vector<8x8xf32> -> vector<8x8xf32>
    %514 = arith.addf %513, %21 : vector<8x8xf32>
    %c2 = arith.constant 2 : index
    %c0_100 = arith.constant 0 : index
    %c0_101 = arith.constant 0 : index
    %515 = vector.load %arg15[%c2, %c0_100, %c0_101] : memref<4x8x8xf32, #tpu.memory_space<vmem>>, vector<1x8x8xf32>
    %516 = vector.shape_cast %515 : vector<1x8x8xf32> to vector<8x8xf32>
    %517 = vector.shape_cast %514 : vector<8x8xf32> to vector<1x8x8xf32>
    tpu.vector_store %arg15[%c2, %c0_100, %c0_101], %517 {strides = array<i32>} : memref<4x8x8xf32, #tpu.memory_space<vmem>>, vector<1x8x8xf32>,
    %518 = arith.truncf %514 : vector<8x8xf32> to vector<8x8xbf16>
    %cst_102 = arith.constant dense<0.000000e+00> : vector<8x128xf32>
    %519 = tpu.matmul %518, %8, %cst_102 {dimension_numbers = #tpu.dot_dimension_numbers<[1], [0], [0], [1], [0, 0, 1, 1], [], []>} : vector<8x8xbf16>, vector<8x128xbf16>, vector<8x128xf32> -> vector<8x128xf32>
    %520 = arith.truncf %489 : vector<8x32xf32> to vector<8x32xbf16>
    %cst_103 = arith.constant dense<0.000000e+00> : vector<8x128xf32>
    %521 = tpu.matmul %520, %9, %cst_103 {dimension_numbers = #tpu.dot_dimension_numbers<[1], [0], [0], [1], [0, 0, 1, 1], [], []>} : vector<8x32xbf16>, vector<32x128xbf16>, vector<8x128xf32> -> vector<8x128xf32>
    %522 = arith.addf %519, %521 : vector<8x128xf32>
    %523 = arith.addf %522, %12 : vector<8x128xf32>
    %524 = vector.extract_strided_slice %523 {offsets = [0, 0], sizes = [8, 96], strides = [1, 1]} : vector<8x128xf32> to vector<8x96xf32>
    %525 = arith.negf %524 : vector<8x96xf32>
    %526 = math.exp %525 : vector<8x96xf32>
    %cst_104 = arith.constant 1.000000e+00 : f32
    %527 = vector.broadcast %cst_104 : f32 to vector<8x96xf32>
    %528 = arith.addf %527, %526 : vector<8x96xf32>
    %529 = arith.divf %527, %528 : vector<8x96xf32>
    %530 = vector.extract_strided_slice %523 {offsets = [0, 96], sizes = [8, 32], strides = [1, 1]} : vector<8x128xf32> to vector<8x32xf32>
    %531 = math.tanh %530 : vector<8x32xf32>
    %532 = vector.extract_strided_slice %529 {offsets = [0, 0], sizes = [8, 32], strides = [1, 1]} : vector<8x96xf32> to vector<8x32xf32>
    %533 = vector.extract_strided_slice %529 {offsets = [0, 32], sizes = [8, 32], strides = [1, 1]} : vector<8x96xf32> to vector<8x32xf32>
    %534 = vector.extract_strided_slice %529 {offsets = [0, 64], sizes = [8, 32], strides = [1, 1]} : vector<8x96xf32> to vector<8x32xf32>
    %535 = arith.mulf %533, %487 : vector<8x32xf32>
    %536 = arith.mulf %532, %531 : vector<8x32xf32>
    %537 = arith.addf %535, %536 : vector<8x32xf32>
    %538 = math.tanh %537 : vector<8x32xf32>
    %539 = arith.mulf %534, %538 : vector<8x32xf32>
    %540 = arith.truncf %539 : vector<8x32xf32> to vector<8x32xbf16>
    %cst_105 = arith.constant dense<0.000000e+00> : vector<8x128xf32>
    %541 = tpu.matmul %540, %13, %cst_105 {dimension_numbers = #tpu.dot_dimension_numbers<[1], [0], [0], [1], [0, 0, 1, 1], [], []>} : vector<8x32xbf16>, vector<32x128xbf16>, vector<8x128xf32> -> vector<8x128xf32>
    %542 = arith.truncf %511 : vector<8x32xf32> to vector<8x32xbf16>
    %cst_106 = arith.constant dense<0.000000e+00> : vector<8x128xf32>
    %543 = tpu.matmul %542, %14, %cst_106 {dimension_numbers = #tpu.dot_dimension_numbers<[1], [0], [0], [1], [0, 0, 1, 1], [], []>} : vector<8x32xbf16>, vector<32x128xbf16>, vector<8x128xf32> -> vector<8x128xf32>
    %544 = arith.addf %541, %543 : vector<8x128xf32>
    %545 = arith.addf %544, %17 : vector<8x128xf32>
    %546 = vector.extract_strided_slice %545 {offsets = [0, 0], sizes = [8, 96], strides = [1, 1]} : vector<8x128xf32> to vector<8x96xf32>
    %547 = arith.negf %546 : vector<8x96xf32>
    %548 = math.exp %547 : vector<8x96xf32>
    %cst_107 = arith.constant 1.000000e+00 : f32
    %549 = vector.broadcast %cst_107 : f32 to vector<8x96xf32>
    %550 = arith.addf %549, %548 : vector<8x96xf32>
    %551 = arith.divf %549, %550 : vector<8x96xf32>
    %552 = vector.extract_strided_slice %545 {offsets = [0, 96], sizes = [8, 32], strides = [1, 1]} : vector<8x128xf32> to vector<8x32xf32>
    %553 = math.tanh %552 : vector<8x32xf32>
    %554 = vector.extract_strided_slice %551 {offsets = [0, 0], sizes = [8, 32], strides = [1, 1]} : vector<8x96xf32> to vector<8x32xf32>
    %555 = vector.extract_strided_slice %551 {offsets = [0, 32], sizes = [8, 32], strides = [1, 1]} : vector<8x96xf32> to vector<8x32xf32>
    %556 = vector.extract_strided_slice %551 {offsets = [0, 64], sizes = [8, 32], strides = [1, 1]} : vector<8x96xf32> to vector<8x32xf32>
    %557 = arith.mulf %555, %509 : vector<8x32xf32>
    %558 = arith.mulf %554, %553 : vector<8x32xf32>
    %559 = arith.addf %557, %558 : vector<8x32xf32>
    %560 = math.tanh %559 : vector<8x32xf32>
    %561 = arith.mulf %556, %560 : vector<8x32xf32>
    %562 = arith.truncf %561 : vector<8x32xf32> to vector<8x32xbf16>
    %cst_108 = arith.constant dense<0.000000e+00> : vector<8x8xf32>
    %563 = tpu.matmul %562, %18, %cst_108 {dimension_numbers = #tpu.dot_dimension_numbers<[1], [0], [0], [1], [0, 0, 1, 1], [], []>} : vector<8x32xbf16>, vector<32x8xbf16>, vector<8x8xf32> -> vector<8x8xf32>
    %564 = arith.addf %563, %21 : vector<8x8xf32>
    %c3 = arith.constant 3 : index
    %c0_109 = arith.constant 0 : index
    %c0_110 = arith.constant 0 : index
    %565 = vector.load %arg15[%c3, %c0_109, %c0_110] : memref<4x8x8xf32, #tpu.memory_space<vmem>>, vector<1x8x8xf32>
    %566 = vector.shape_cast %565 : vector<1x8x8xf32> to vector<8x8xf32>
    %567 = vector.shape_cast %564 : vector<8x8xf32> to vector<1x8x8xf32>
    tpu.vector_store %arg15[%c3, %c0_109, %c0_110], %567 {strides = array<i32>} : memref<4x8x8xf32, #tpu.memory_space<vmem>>, vector<1x8x8xf32>,
    return
  }
}

</mosaic_0001>

<bundles_post_ra>
// kernel: tpu_custom_call.1
= control target key start
LH: loop header
LB: loop body
LE: loop exit
PB: predicated region body
PF: predicated region fallthrough
CT: control target
= control target key end

     0   :  { %20 = vsyncpa [#allocation3], 0  ;;  %s4529_s0 = inlined_call_operand.vmem [shape: f32[64,8], index: 0, kind: input, shape index: {}]   ;;  %s4530_s1 = inlined_call_operand.hbm [shape: bf16[8,128], index: 1, kind: input, shape index: {}]   ;;  %s4531_s2 = inlined_call_operand.vmem [shape: bf16[32,128], index: 2, kind: input, shape index: {}]   ;;  %s4532_s3 = inlined_call_operand.vmem [shape: f32[1,128], index: 3, kind: input, shape index: {}]   ;;  %s4533_s4 = inlined_call_operand.vmem [shape: bf16[32,128], index: 4, kind: input, shape index: {}]   ;;  %s4534_s5 = inlined_call_operand.vmem [shape: bf16[32,128], index: 5, kind: input, shape index: {}]   ;;  %s4535_s6 = inlined_call_operand.vmem [shape: f32[1,128], index: 6, kind: input, shape index: {}]   ;;  %s4536_s7 = inlined_call_operand.vmem [shape: bf16[8,128], index: 7, kind: input, shape index: {}]   ;;  %s4537_s8 = inlined_call_operand.vmem [shape: bf16[32,128], index: 8, kind: input, shape index: {}]   ;;  %s4538_s9 = inlined_call_operand.vmem [shape: f32[1,128], index: 9, kind: input, shape index: {}]   ;;  %s4539_s10 = inlined_call_operand.vmem [shape: bf16[32,128], index: 10, kind: input, shape index: {}]   ;;  %s4540_s11 = inlined_call_operand.vmem [shape: bf16[32,128], index: 11, kind: input, shape index: {}]   ;;  %s4541_s12 = inlined_call_operand.vmem [shape: f32[1,128], index: 12, kind: input, shape index: {}]   ;;  %s4542_s13 = inlined_call_operand.vmem [shape: bf16[32,8], index: 13, kind: input, shape index: {}]   ;;  %s4543_s14 = inlined_call_operand.vmem [shape: f32[1,8], index: 14, kind: input, shape index: {}]   ;;  %s4544_s15 = inlined_call_operand.hbm [shape: f32[4,8,8], index: 15, kind: output, shape index: {}]  }
   0x1   :  { %21 = vsyncpa [#allocation4], 0  ;;  %s3731_s18 = smov [#allocation2]   ;;  %s3683_s22 = scalar_lea.hbm %s4530_s1, 64 }
   0x2   :  { %s30_s19 = sshll.u32 %s3731_s18, 4  ;;  %p3684_p0 = scmp.ne.s32.totalorder %s4530_s1, %s3683_s22  ;;  %s31_s19 = int_to_ptr.vmem [resolvable:$true] %s30_s19 }
   0x3   :  { %p3687_p1 = scmp.lt.u32.totalorder %s3683_s22, %s4530_s1 }
   0x5   :  { %p3689_p2 = pnand %p3687_p1, %p3684_p0 }
   0x7   :  { %3692 = shalt.err (!%p3689_p2)
}
   0x8   :  { %s3693_s27 = scalar_lea.vmem %s31_s19, 64  ;;  %p3698_p4 = scmp.lt.s32.totalorder %s31_s19, %s31_s19 }
   0x9   :  { %p3694_p3 = scmp.ne.s32.totalorder %s31_s19, %s3693_s27  ;;  %p3699_p5 = scmp.lt.s32.totalorder %s3693_s27, %s3693_s27 }
   0xb   :  { %p3700_p6 = por %p3699_p5, %p3698_p4 }
   0xd   :  { %p3701_p7 = pnand %p3700_p6, %p3694_p3 }
   0xf   :  { %3704 = shalt.err (!%p3701_p7)
}
  0x10   :  { %33 = dma.hbm_to_vmem [thread:$0]  %s4530_s1, 64, %s31_s19, [#allocation3]  }
  0x11   :  { %3727 = dma.done.wait [#allocation3], 64  }
  0x12   :  { %3728 = vsyncadd [#allocation3], 4294967232  ;;  %v3732_v0 = vmov 0.0   ;;  %vm3733_vm0 = vmmov 0   ;;  %vm154_vm1 = vcmask 1043456   ;;  %v3840_v3 = vld [vmem:[%s4531_s2] sm:$0xff]  }
  0x13   :  { %3114 = vmatprep.subr.bf16.mxu1 %v3732_v0  ;;  %3118 = vmatprep.mubr.msk.bf16.mxu1 %vm3733_vm0, %v3732_v0  ;;  %v64_v1 = vld [vmem:[#allocation2] sm:$0xf]  ;;  %v124_v5 = vld [vmem:[%s4529_s0 + $0x8] sm:$0xff]  ;;  %vm141_vm2 = vcmask 64512   ;;  %v125_v7 = vld [vmem:[%s4529_s0 + $0x10] sm:$0xff]  ;;  %v3734_v11 = vmov 0  }
  0x14   :  { %3458 = vmatprep.subr.msk.bf16.mxu0 %vm154_vm1, %v64_v1  ;;  %v156_v2 = vsel %vm154_vm1, %v64_v1, 0  ;;  %v123_v4 = vld [vmem:[%s4529_s0] sm:$0xff]  ;;  %v126_v8 = vld [vmem:[%s4529_s0 + $0x18] sm:$0xff]  ;;  %3115 = vmatpush3.bf16.msra.mxu1 %v3840_v3  ;;  %v3858_v10 = vld [vmem:[%s4531_s2 + $0x8] sm:$0xff]   ;;  %s3735_s28 = smov 32   ;;  %s3736_s30 = smov 64  }
  0x15   :  { %3105 = vmatpush3.bf16.msra.mxu0 %v156_v2  ;;  %v131_v6 = vpack.c.bf16 %v124_v5, %v123_v4  ;;  %v132_v9 = vpack.c.bf16 %v126_v8, %v125_v7  ;;  %3116 = vmatprep.subr.bf16.mxu1 %v3732_v0  ;;  %v3871_v12 = vld [vmem:[%s4532_s3] ss:$0 sm:$0xff]  ;;  %v128_v36 = vld [vmem:[%s4529_s0 + $0x28] sm:$0xff]  ;;  %v129_v37 = vld [vmem:[%s4529_s0 + $0x30] sm:$0xff]  ;;  %vm235_vm3 = vcmask 261120  }
  0x16   :  { %3130 = vmatprep.subr.bf16.mxu0 %v3732_v0  ;;  %v3888_v33 = vld [vmem:[%s4534_s5] sm:$0xff]   ;;  %v3909_v39 = vld [vmem:[%s4534_s5 + $0x8] sm:$0xff]   ;;  %v130_v40 = vld [vmem:[%s4529_s0 + $0x38] sm:$0xff] }
  0x17   :  { %3106 = vmatprep.mubr.msk.bf16.mxu0 %vm141_vm2, %v131_v6  ;;  %v3893_v34 = vld [vmem:[%s4533_s4] sm:$0xff]   ;;  %v3917_v41 = vld [vmem:[%s4533_s4 + $0x8] sm:$0xff]   ;;  %v134_v42 = vpack.c.bf16 %v130_v40, %v129_v37 }
  0x18   :  { %3107 = vmatmul.mubr.msk.bf16.vlgmr.msra.gmra.mrb[0].mxu0 %vm141_vm2, %v132_v9  ;;  %3117 = vmatpush3.bf16.msra.mxu1 %v3858_v10  ;;  %v127_v35 = vld [vmem:[%s4529_s0 + $0x20] sm:$0xff] }
  0x19   :  { %3122 = vmatprep.subr.bf16.mxu1 %v3732_v0  ;;  %3131 = vmatpush3.bf16.msra.mxu0 %v3893_v34  ;;  %v133_v38 = vpack.c.bf16 %v128_v36, %v127_v35  ;;  %v3964_v57 = vld [vmem:[%s4535_s6] ss:$0 sm:$0xff] }
  0x1a   :  { %3132 = vmatprep.subr.bf16.mxu0 %v3732_v0 }
  0x1b   :  { %3119 = vmatmul.mubr.bf16.vlgmr.msra.gmra.mrb[0].mxu1 %v3734_v11  ;;  %3110 = vmatprep.mubr.msk.bf16.mxu0 %vm141_vm2, %v133_v38 }
  0x1c   :  { %3126 = vmatprep.mubr.msk.bf16.mxu1 %vm3733_vm0, %v3732_v0  ;;  %3123 = vmatpush3.bf16.msra.mxu1 %v3888_v33 }
  0x1d   :  { %3124 = vmatprep.subr.bf16.mxu1 %v3732_v0  ;;  %3133 = vmatpush3.bf16.msra.mxu0 %v3917_v41 }
  0x1e   :  { %3146 = vmatprep.subr.bf16.mxu0 %v3732_v0 }
  0x20   :  { %3111 = vmatmul.mubr.msk.bf16.gmra.mrb[4].mxu0 %vm141_vm2, %v134_v42  ;;  %3125 = vmatpush3.bf16.msra.mxu1 %v3909_v39 }
  0x21   :  { %3138 = vmatprep.subr.bf16.mxu1 %v3732_v0  ;;  %3134 = vmatprep.mubr.msk.bf16.mxu0 %vm3733_vm0, %v3732_v0 }
  0x23   :  { %3127 = vmatmul.mubr.bf16.vlgmr.msra.gmra.mrb[4].mxu1 %v3734_v11 }
  0x24   :  { %3139 = vmatpush3.bf16.msra.mxu1 %v3840_v3  ;;  %3142 = vmatprep.mubr.msk.bf16.mxu1 %vm3733_vm0, %v3732_v0 }
  0x25   :  { %3140 = vmatprep.subr.bf16.mxu1 %v3732_v0 }
  0x28   :  { %3141 = vmatpush3.bf16.msra.mxu1 %v3858_v10 }
  0x29   :  { %3154 = vmatprep.subr.bf16.mxu1 %v3732_v0 }
  0xeb   :  { %v3873_v13 = vpop.f32.mrb[0].mxu0 }
  0xec   :  { %v192_v14 = vpop.f32.mrb[1].mxu0 }
  0xed   :  { %v193_v15 = vadd.f32 %v3871_v12, %v192_v14  ;;  %v3876_v16 = vpop.f32.mrb[2].mxu0 }
  0xee   :  { %v3878_v17 = vpop.f32.mrb[3].mxu0  ;;  %v273_v18 = vpop.f32.mrb[0].mxu1 }
  0xef   :  { %v279_v19 = vadd.f32 %v273_v18, %v193_v15  ;;  %v3120_v20 = vpop.f32.mrb[1].mxu1  ;;  %v196_v56 = vadd.f32 %v3871_v12, %v3878_v17 }
  0xf0   :  { %v276_v21 = vpop.f32.mrb[2].mxu1 }
  0xf1   :  { %3482 = vtanh.f32 %v279_v19  ;;  %v3121_v22 = vpop.f32.mrb[3].mxu1  ;;  %v2893_v24 = vmul.f32 -1.442695, %v279_v19 }
  0xf3   :  { %3484 = vpow2.f32 %v2893_v24  ;;  %v3937_v47 = vpop.f32.mrb[4].mxu0 }
  0xf4   :  { %v3939_v48 = vpop.f32.mrb[5].mxu0 }
  0xf5   :  { %v3941_v49 = vpop.f32.mrb[6].mxu0 }
  0xf6   :  { %v3943_v50 = vpop.f32.mrb[7].mxu0  ;;  %v351_v51 = vpop.f32.mrb[4].mxu1 }
  0xf7   :  { %v3128_v52 = vpop.f32.mrb[5].mxu1 }
  0xf8   :  { %v354_v53 = vpop.f32.mrb[6].mxu1 }
  0xf9   :  { %v3129_v54 = vpop.f32.mrb[7].mxu1 }
  0xfb   :  { %v3483_v23 = vpop.eup %3482 }
  0xfc   :  { %289 = vrot.lane.b32.xlu0 %v3483_v23, %s3735_s28 }
  0xfd   :  { %v3485_v25 = vpop.eup %3484 }
  0xfe   :  { %v283_v26 = vadd.f32 1.0, %v3485_v25 }
 0x100   :  { %3486 = vrcp.f32 %v283_v26 }
 0x10a   :  { %v3487_v27 = vpop.eup %3486 }
 0x10b   :  { %v287_v30 = vmul.f32 0.0, %v3487_v27 }
 0x16e   :  { %v290_v28 = vpop.permute.xlu0 %289 }
 0x16f   :  { %v292_v29 = vmul.f32 %v3487_v27, %v290_v28 }
 0x171   :  { %294 = vrot.lane.b32.xlu0 %v292_v29, %s3735_s28 }
 0x1e3   :  { %v295_v31 = vpop.permute.xlu0 %294 }
 0x1e4   :  { %v3882_v32 = vadd.f32 %v295_v31, %v287_v30 }
 0x1e6   :  { %3488 = vtanh.f32 %v3882_v32 }
 0x1f0   :  { %v3489_v43 = vpop.eup %3488 }
 0x1f1   :  { %300 = vrot.lane.b32.xlu1 %v3489_v43, %s3735_s28 }
 0x263   :  { %v301_v44 = vpop.permute.xlu1 %300 }
 0x264   :  { %v303_v45 = vmul.f32 %v3487_v27, %v301_v44 }
 0x266   :  { %v304_v46 = vpack.c.bf16 %v303_v45, %v303_v45 }
 0x268   :  { %358 = vrot.lane.b32.xlu1 %v304_v46, %s3736_s30 }
 0x2da   :  { %v359_v55 = vpop.permute.xlu1 %358 }
 0x2db   :  { %3135 = vmatmul.mubr.msk.bf16.vlgmr.msra.gmra.mrb[8].mxu0 %vm235_vm3, %v359_v55  ;;  %3143 = vmatmul.mubr.msk.bf16.vlgmr.msra.gmra.mrb[8].mxu1 %vm235_vm3, %v359_v55 }
 0x2dc   :  { %3155 = vmatpush3.bf16.msra.mxu1 %v3893_v34  ;;  %3147 = vmatpush3.bf16.msra.mxu0 %v3888_v33 }
 0x2dd   :  { %3156 = vmatprep.subr.bf16.mxu1 %v3732_v0  ;;  %3148 = vmatprep.subr.bf16.mxu0 %v3732_v0 }
 0x2de   :  { %3158 = vmatprep.mubr.msk.bf16.mxu1 %vm3733_vm0, %v3732_v0  ;;  %3150 = vmatprep.mubr.msk.bf16.mxu0 %vm3733_vm0, %v3732_v0 }
 0x2e0   :  { %3157 = vmatpush3.bf16.msra.mxu1 %v3917_v41  ;;  %3149 = vmatpush3.bf16.msra.mxu0 %v3909_v39 }
 0x2e1   :  { %3162 = vmatprep.subr.bf16.mxu0 %v3732_v0  ;;  %3170 = vmatprep.subr.bf16.mxu1 %v3732_v0 }
 0x3ae   :  { %v409_v58 = vpop.f32.mrb[8].mxu0  ;;  %v474_v59 = vpop.f32.mrb[8].mxu1 }
 0x3af   :  { %v410_v60 = vadd.f32 %v409_v58, %v351_v51  ;;  %v480_v61 = vadd.f32 %v474_v59, %v196_v56  ;;  %v3136_v62 = vpop.f32.mrb[9].mxu0  ;;  %v3144_v63 = vpop.f32.mrb[9].mxu1 }
 0x3b0   :  { %v412_v1 = vpop.f32.mrb[10].mxu0  ;;  %v477_v2 = vpop.f32.mrb[10].mxu1 }
 0x3b1   :  { %v415_v4 = vadd.f32 %v3964_v57, %v410_v60  ;;  %3490 = vtanh.f32 %v480_v61  ;;  %v3137_v5 = vpop.f32.mrb[11].mxu0  ;;  %v3145_v6 = vpop.f32.mrb[11].mxu1  ;;  %v2901_v9 = vmul.f32 -1.442695, %v480_v61  ;;  %v201_v60 = vadd.f32 %v3873_v13, %v3871_v12 }
 0x3b3   :  { %3492 = vtanh.f32 %v415_v4  ;;  %v2899_v11 = vmul.f32 -1.442695, %v415_v4 }
 0x3b4   :  { %3494 = vpow2.f32 %v2901_v9 }
 0x3b5   :  { %3496 = vpow2.f32 %v2899_v11 }
 0x3bb   :  { %v3491_v7 = vpop.eup %3490 }
 0x3bc   :  { %490 = vrot.lane.b32.xlu1 %v3491_v7, %s3735_s28 }
 0x3bd   :  { %v3493_v8 = vpop.eup %3492 }
 0x3be   :  { %425 = vrot.lane.b32.xlu0 %v3493_v8, %s3735_s28  ;;  %v3495_v14 = vpop.eup %3494 }
 0x3bf   :  { %v3497_v15 = vpop.eup %3496  ;;  %v484_v17 = vadd.f32 1.0, %v3495_v14 }
 0x3c0   :  { %v419_v18 = vadd.f32 1.0, %v3497_v15 }
 0x3c1   :  { %3498 = vrcp.f32 %v484_v17 }
 0x3c2   :  { %3500 = vrcp.f32 %v419_v18 }
 0x3cb   :  { %v3499_v19 = vpop.eup %3498 }
 0x3cc   :  { %v3501_v22 = vpop.eup %3500  ;;  %v488_v25 = vmul.f32 %v3499_v19, %v3882_v32 }
 0x3cd   :  { %v423_v28 = vmul.f32 0.0, %v3501_v22 }
 0x42e   :  { %v491_v20 = vpop.permute.xlu1 %490 }
 0x42f   :  { %v493_v21 = vmul.f32 %v3499_v19, %v491_v20 }
 0x430   :  { %v426_v23 = vpop.permute.xlu0 %425 }
 0x431   :  { %v428_v24 = vmul.f32 %v3501_v22, %v426_v23  ;;  %495 = vrot.lane.b32.xlu1 %v493_v21, %s3735_s28 }
 0x433   :  { %430 = vrot.lane.b32.xlu0 %v428_v24, %s3735_s28 }
 0x4a3   :  { %v496_v26 = vpop.permute.xlu1 %495 }
 0x4a4   :  { %v3972_v27 = vadd.f32 %v496_v26, %v488_v25 }
 0x4a5   :  { %v431_v29 = vpop.permute.xlu0 %430 }
 0x4a6   :  { %3502 = vtanh.f32 %v3972_v27  ;;  %v3975_v30 = vadd.f32 %v431_v29, %v423_v28 }
 0x4a8   :  { %3504 = vtanh.f32 %v3975_v30 }
 0x4b0   :  { %v3503_v31 = vpop.eup %3502 }
 0x4b1   :  { %501 = vrot.lane.b32.xlu1 %v3503_v31, %s3735_s28 }
 0x4b2   :  { %v3505_v35 = vpop.eup %3504 }
 0x4b3   :  { %436 = vrot.lane.b32.xlu0 %v3505_v35, %s3735_s28 }
 0x523   :  { %v502_v36 = vpop.permute.xlu1 %501 }
 0x524   :  { %v504_v37 = vmul.f32 %v3499_v19, %v502_v36 }
 0x525   :  { %v437_v32 = vpop.permute.xlu0 %436 }
 0x526   :  { %v505_v38 = vpack.c.bf16 %v504_v37, %v504_v37  ;;  %v439_v40 = vmul.f32 %v3501_v22, %v437_v32 }
 0x528   :  { %v506_v42 = vpack.c.bf16 %v439_v40, %v439_v40  ;;  %554 = vrot.lane.b32.xlu1 %v505_v38, %s3736_s30 }
 0x52a   :  { %508 = vrot.lane.b32.xlu0 %v506_v42, %s3736_s30 }
 0x59a   :  { %v555_v43 = vpop.permute.xlu1 %554 }
 0x59b   :  { %3159 = vmatmul.mubr.msk.bf16.vlgmr.msra.gmra.mrb[12].mxu1 %vm235_vm3, %v555_v43 }
 0x59c   :  { %v509_v44 = vpop.permute.xlu0 %508  ;;  %3171 = vmatpush3.bf16.msra.mxu1 %v3888_v33  ;;  %3174 = vmatprep.mubr.msk.bf16.mxu1 %vm3733_vm0, %v3732_v0 }
 0x59d   :  { %3151 = vmatmul.mubr.msk.bf16.vlgmr.msra.gmra.mrb[12].mxu0 %vm235_vm3, %v509_v44  ;;  %3172 = vmatprep.subr.bf16.mxu1 %v3732_v0 }
 0x59e   :  { %3163 = vmatpush3.bf16.msra.mxu0 %v3840_v3  ;;  %3166 = vmatprep.mubr.msk.bf16.mxu0 %vm3733_vm0, %v3732_v0 }
 0x59f   :  { %3164 = vmatprep.subr.bf16.mxu0 %v3732_v0 }
 0x5a0   :  { %3173 = vmatpush3.bf16.msra.mxu1 %v3909_v39 }
 0x5a1   :  { %3186 = vmatprep.subr.bf16.mxu1 %v3732_v0 }
 0x5a2   :  { %3165 = vmatpush3.bf16.msra.mxu0 %v3858_v10 }
 0x5a3   :  { %3178 = vmatprep.subr.bf16.mxu0 %v3732_v0 }
 0x5a5   :  { %3167 = vmatmul.mubr.msk.bf16.vlgmr.msra.gmra.mrb[16].mxu0 %vm235_vm3, %v555_v43 }
 0x5a6   :  { %3179 = vmatpush3.bf16.msra.mxu0 %v3893_v34  ;;  %3182 = vmatprep.mubr.msk.bf16.mxu0 %vm3733_vm0, %v3732_v0 }
 0x5a7   :  { %3180 = vmatprep.subr.bf16.mxu0 %v3732_v0 }
 0x5aa   :  { %3181 = vmatpush3.bf16.msra.mxu0 %v3917_v41 }
 0x5ab   :  { %3194 = vmatprep.subr.bf16.mxu0 %v3732_v0 }
 0x66e   :  { %v593_v45 = vpop.f32.mrb[12].mxu1 }
 0x66f   :  { %v3160_v46 = vpop.f32.mrb[13].mxu1 }
 0x670   :  { %v547_v51 = vpop.f32.mrb[12].mxu0  ;;  %v596_v52 = vpop.f32.mrb[14].mxu1  ;;  %v204_v46 = vadd.f32 %v3876_v16, %v3871_v12 }
 0x671   :  { %v594_v53 = vadd.f32 %v593_v45, %v547_v51  ;;  %v3152_v54 = vpop.f32.mrb[13].mxu0  ;;  %v3161_v55 = vpop.f32.mrb[15].mxu1 }
 0x672   :  { %v550_v56 = vpop.f32.mrb[14].mxu0 }
 0x673   :  { %v599_v58 = vadd.f32 %v3964_v57, %v594_v53  ;;  %v3153_v59 = vpop.f32.mrb[15].mxu0 }
 0x675   :  { %3506 = vtanh.f32 %v599_v58  ;;  %v2904_v6 = vmul.f32 -1.442695, %v599_v58 }
 0x678   :  { %v658_v61 = vpop.f32.mrb[16].mxu0 }
 0x679   :  { %v664_v62 = vadd.f32 %v658_v61, %v201_v60  ;;  %v3168_v63 = vpop.f32.mrb[17].mxu0 }
 0x67a   :  { %v661_v1 = vpop.f32.mrb[18].mxu0 }
 0x67b   :  { %3508 = vtanh.f32 %v664_v62  ;;  %v3169_v2 = vpop.f32.mrb[19].mxu0  ;;  %v2906_v7 = vmul.f32 -1.442695, %v664_v62 }
 0x67c   :  { %3510 = vpow2.f32 %v2904_v6 }
 0x67d   :  { %3512 = vpow2.f32 %v2906_v7 }
 0x67f   :  { %v3507_v4 = vpop.eup %3506 }
 0x680   :  { %609 = vrot.lane.b32.xlu0 %v3507_v4, %s3735_s28 }
 0x685   :  { %v3509_v5 = vpop.eup %3508 }
 0x686   :  { %674 = vrot.lane.b32.xlu1 %v3509_v5, %s3735_s28  ;;  %v3511_v8 = vpop.eup %3510 }
 0x687   :  { %v603_v9 = vadd.f32 1.0, %v3511_v8  ;;  %v3513_v11 = vpop.eup %3512 }
 0x688   :  { %v668_v13 = vadd.f32 1.0, %v3513_v11 }
 0x689   :  { %3514 = vrcp.f32 %v603_v9 }
 0x68a   :  { %3516 = vrcp.f32 %v668_v13 }
 0x693   :  { %v3515_v14 = vpop.eup %3514 }
 0x694   :  { %v3517_v18 = vpop.eup %3516  ;;  %v607_v21 = vmul.f32 %v3515_v14, %v3975_v30 }
 0x695   :  { %v672_v24 = vmul.f32 %v3517_v18, %v3972_v27 }
 0x6f2   :  { %v610_v15 = vpop.permute.xlu0 %609 }
 0x6f3   :  { %v612_v17 = vmul.f32 %v3515_v14, %v610_v15 }
 0x6f5   :  { %614 = vrot.lane.b32.xlu0 %v612_v17, %s3735_s28 }
 0x6f8   :  { %v675_v19 = vpop.permute.xlu1 %674 }
 0x6f9   :  { %v677_v20 = vmul.f32 %v3517_v18, %v675_v19 }
 0x6fb   :  { %679 = vrot.lane.b32.xlu1 %v677_v20, %s3735_s28 }
 0x767   :  { %v615_v22 = vpop.permute.xlu0 %614 }
 0x768   :  { %v4011_v23 = vadd.f32 %v615_v22, %v607_v21 }
 0x76a   :  { %3518 = vtanh.f32 %v4011_v23 }
 0x76d   :  { %v680_v25 = vpop.permute.xlu1 %679 }
 0x76e   :  { %v4015_v26 = vadd.f32 %v680_v25, %v672_v24 }
 0x770   :  { %3520 = vtanh.f32 %v4015_v26 }
 0x774   :  { %v3519_v28 = vpop.eup %3518 }
 0x775   :  { %620 = vrot.lane.b32.xlu0 %v3519_v28, %s3735_s28 }
 0x77a   :  { %v3521_v29 = vpop.eup %3520 }
 0x77b   :  { %685 = vrot.lane.b32.xlu1 %v3521_v29, %s3735_s28 }
 0x7e7   :  { %v621_v31 = vpop.permute.xlu0 %620 }
 0x7e8   :  { %v623_v30 = vmul.f32 %v3515_v14, %v621_v31 }
 0x7ea   :  { %v690_v35 = vpack.c.bf16 %v623_v30, %v623_v30 }
 0x7ec   :  { %692 = vrot.lane.b32.xlu0 %v690_v35, %s3736_s30 }
 0x7ed   :  { %v686_v36 = vpop.permute.xlu1 %685 }
 0x7ee   :  { %v688_v37 = vmul.f32 %v3517_v18, %v686_v36 }
 0x7f0   :  { %v689_v32 = vpack.c.bf16 %v688_v37, %v688_v37 }
 0x7f2   :  { %738 = vrot.lane.b32.xlu1 %v689_v32, %s3736_s30 }
 0x85e   :  { %v693_v27 = vpop.permute.xlu0 %692 }
 0x85f   :  { %3175 = vmatmul.mubr.msk.bf16.vlgmr.msra.gmra.mrb[16].mxu1 %vm235_vm3, %v693_v27 }
 0x860   :  { %3187 = vmatpush3.bf16.msra.mxu1 %v3840_v3  ;;  %3190 = vmatprep.mubr.msk.bf16.mxu1 %vm3733_vm0, %v3732_v0 }
 0x861   :  { %3188 = vmatprep.subr.bf16.mxu1 %v3732_v0 }
 0x864   :  { %3189 = vmatpush3.bf16.msra.mxu1 %v3858_v10  ;;  %v739_v38 = vpop.permute.xlu1 %738 }
 0x865   :  { %3183 = vmatmul.mubr.msk.bf16.vlgmr.msra.gmra.mrb[20].mxu0 %vm235_vm3, %v739_v38  ;;  %3202 = vmatprep.subr.bf16.mxu1 %v3732_v0 }
 0x866   :  { %3195 = vmatpush3.bf16.msra.mxu0 %v3888_v33  ;;  %3198 = vmatprep.mubr.msk.bf16.mxu0 %vm3733_vm0, %v3732_v0 }
 0x867   :  { %3191 = vmatmul.mubr.msk.bf16.vlgmr.msra.gmra.mrb[20].mxu1 %vm235_vm3, %v739_v38  ;;  %3196 = vmatprep.subr.bf16.mxu0 %v3732_v0 }
 0x868   :  { %3203 = vmatpush3.bf16.msra.mxu1 %v3893_v34  ;;  %3206 = vmatprep.mubr.msk.bf16.mxu1 %vm3733_vm0, %v3732_v0 }
 0x869   :  { %3204 = vmatprep.subr.bf16.mxu1 %v3732_v0 }
 0x86a   :  { %3197 = vmatpush3.bf16.msra.mxu0 %v3909_v39 }
 0x86b   :  { %3210 = vmatprep.subr.bf16.mxu0 %v3732_v0 }
 0x86c   :  { %3205 = vmatpush3.bf16.msra.mxu1 %v3917_v41 }
 0x86d   :  { %3218 = vmatprep.subr.bf16.mxu1 %v3732_v0 }
 0x932   :  { %v731_v40 = vpop.f32.mrb[16].mxu1 }
 0x933   :  { %v3176_v42 = vpop.f32.mrb[17].mxu1 }
 0x934   :  { %v734_v43 = vpop.f32.mrb[18].mxu1 }
 0x935   :  { %v3177_v44 = vpop.f32.mrb[19].mxu1 }
 0x938   :  { %v777_v45 = vpop.f32.mrb[20].mxu0 }
 0x939   :  { %v778_v51 = vadd.f32 %v777_v45, %v731_v40  ;;  %v3184_v52 = vpop.f32.mrb[21].mxu0 }
 0x93a   :  { %v780_v53 = vpop.f32.mrb[22].mxu0  ;;  %v842_v54 = vpop.f32.mrb[20].mxu1 }
 0x93b   :  { %v783_v55 = vadd.f32 %v3964_v57, %v778_v51  ;;  %v848_v56 = vadd.f32 %v842_v54, %v204_v46  ;;  %v3185_v58 = vpop.f32.mrb[23].mxu0  ;;  %v3192_v59 = vpop.f32.mrb[21].mxu1  ;;  %v209_v46 = vadd.f32 %v3871_v12, %v3939_v48 }
 0x93c   :  { %v845_v60 = vpop.f32.mrb[22].mxu1 }
 0x93d   :  { %3522 = vtanh.f32 %v783_v55  ;;  %v3193_v61 = vpop.f32.mrb[23].mxu1  ;;  %v2909_v16 = vmul.f32 -1.442695, %v783_v55  ;;  %v2911_v1 = vmul.f32 -1.442695, %v848_v56 }
 0x93e   :  { %3524 = vtanh.f32 %v848_v56 }
 0x93f   :  { %3526 = vpow2.f32 %v2909_v16 }
 0x940   :  { %3528 = vpow2.f32 %v2911_v1 }
 0x947   :  { %v3523_v62 = vpop.eup %3522 }
 0x948   :  { %v3525_v63 = vpop.eup %3524  ;;  %793 = vrot.lane.b32.xlu0 %v3523_v62, %s3735_s28 }
 0x949   :  { %858 = vrot.lane.b32.xlu1 %v3525_v63, %s3735_s28  ;;  %v3527_v2 = vpop.eup %3526 }
 0x94a   :  { %v3529_v4 = vpop.eup %3528  ;;  %v787_v5 = vadd.f32 1.0, %v3527_v2 }
 0x94b   :  { %v852_v6 = vadd.f32 1.0, %v3529_v4 }
 0x94c   :  { %3530 = vrcp.f32 %v787_v5 }
 0x94d   :  { %3532 = vrcp.f32 %v852_v6 }
 0x956   :  { %v3531_v7 = vpop.eup %3530 }
 0x957   :  { %v3533_v9 = vpop.eup %3532  ;;  %v791_v15 = vmul.f32 %v3531_v7, %v4011_v23 }
 0x958   :  { %v856_v17 = vmul.f32 %v3533_v9, %v4015_v26 }
 0x9ba   :  { %v794_v8 = vpop.permute.xlu0 %793 }
 0x9bb   :  { %v859_v11 = vpop.permute.xlu1 %858  ;;  %v796_v13 = vmul.f32 %v3531_v7, %v794_v8 }
 0x9bc   :  { %v861_v14 = vmul.f32 %v3533_v9, %v859_v11 }
 0x9bd   :  { %798 = vrot.lane.b32.xlu0 %v796_v13, %s3735_s28 }
 0x9be   :  { %863 = vrot.lane.b32.xlu1 %v861_v14, %s3735_s28 }
 0xa2f   :  { %v799_v18 = vpop.permute.xlu0 %798 }
 0xa30   :  { %v864_v19 = vpop.permute.xlu1 %863  ;;  %v4052_v20 = vadd.f32 %v799_v18, %v791_v15 }
 0xa31   :  { %v4054_v21 = vadd.f32 %v864_v19, %v856_v17 }
 0xa32   :  { %3534 = vtanh.f32 %v4052_v20 }
 0xa33   :  { %3536 = vtanh.f32 %v4054_v21 }
 0xa3c   :  { %v3535_v22 = vpop.eup %3534 }
 0xa3d   :  { %v3537_v24 = vpop.eup %3536  ;;  %804 = vrot.lane.b32.xlu0 %v3535_v22, %s3735_s28 }
 0xa3e   :  { %869 = vrot.lane.b32.xlu1 %v3537_v24, %s3735_s28 }
 0xaaf   :  { %v805_v25 = vpop.permute.xlu0 %804 }
 0xab0   :  { %v870_v23 = vpop.permute.xlu1 %869  ;;  %v807_v28 = vmul.f32 %v3531_v7, %v805_v25 }
 0xab1   :  { %v872_v26 = vmul.f32 %v3533_v9, %v870_v23 }
 0xab2   :  { %v874_v29 = vpack.c.bf16 %v807_v28, %v807_v28 }
 0xab3   :  { %v873_v31 = vpack.c.bf16 %v872_v26, %v872_v26 }
 0xab4   :  { %876 = vrot.lane.b32.xlu0 %v874_v29, %s3736_s30 }
 0xab5   :  { %922 = vrot.lane.b32.xlu1 %v873_v31, %s3736_s30 }
 0xb26   :  { %v877_v30 = vpop.permute.xlu0 %876 }
 0xb27   :  { %v923_v35 = vpop.permute.xlu1 %922  ;;  %3199 = vmatmul.mubr.msk.bf16.vlgmr.msra.gmra.mrb[24].mxu0 %vm235_vm3, %v877_v30 }
 0xb28   :  { %3207 = vmatmul.mubr.msk.bf16.vlgmr.msra.gmra.mrb[24].mxu1 %vm235_vm3, %v923_v35  ;;  %3211 = vmatpush3.bf16.msra.mxu0 %v3840_v3 }
 0xb29   :  { %3212 = vmatprep.subr.bf16.mxu0 %v3732_v0  ;;  %3214 = vmatprep.mubr.msk.bf16.mxu0 %vm3733_vm0, %v3732_v0 }
 0xb2a   :  { %3219 = vmatpush3.bf16.msra.mxu1 %v3888_v33  ;;  %3222 = vmatprep.mubr.msk.bf16.mxu1 %vm3733_vm0, %v3732_v0 }
 0xb2b   :  { %3220 = vmatprep.subr.bf16.mxu1 %v3732_v0 }
 0xb2c   :  { %3213 = vmatpush3.bf16.msra.mxu0 %v3858_v10 }
 0xb2d   :  { %3226 = vmatprep.subr.bf16.mxu0 %v3732_v0 }
 0xb2e   :  { %3221 = vmatpush3.bf16.msra.mxu1 %v3909_v39 }
 0xb2f   :  { %3215 = vmatmul.mubr.msk.bf16.vlgmr.msra.gmra.mrb[28].mxu0 %vm235_vm3, %v923_v35  ;;  %3234 = vmatprep.subr.bf16.mxu1 %v3732_v0 }
 0xb30   :  { %3227 = vmatpush3.bf16.msra.mxu0 %v3893_v34  ;;  %3230 = vmatprep.mubr.msk.bf16.mxu0 %vm3733_vm0, %v3732_v0 }
 0xb31   :  { %3228 = vmatprep.subr.bf16.mxu0 %v3732_v0 }
 0xb34   :  { %3229 = vmatpush3.bf16.msra.mxu0 %v3917_v41 }
 0xb35   :  { %3242 = vmatprep.subr.bf16.mxu0 %v3732_v0 }
 0xbfa   :  { %v915_v36 = vpop.f32.mrb[24].mxu0 }
 0xbfb   :  { %v961_v37 = vpop.f32.mrb[24].mxu1  ;;  %v3200_v32 = vpop.f32.mrb[25].mxu0 }
 0xbfc   :  { %v962_v27 = vadd.f32 %v961_v37, %v915_v36  ;;  %v3208_v38 = vpop.f32.mrb[25].mxu1  ;;  %v918_v40 = vpop.f32.mrb[26].mxu0  ;;  %v212_v37 = vadd.f32 %v3871_v12, %v3943_v50 }
 0xbfd   :  { %v964_v42 = vpop.f32.mrb[26].mxu1  ;;  %v3201_v43 = vpop.f32.mrb[27].mxu0 }
 0xbfe   :  { %v967_v44 = vadd.f32 %v3964_v57, %v962_v27  ;;  %v3209_v45 = vpop.f32.mrb[27].mxu1 }
 0xc00   :  { %3538 = vtanh.f32 %v967_v44  ;;  %v2914_v59 = vmul.f32 -1.442695, %v967_v44 }
 0xc02   :  { %v1026_v51 = vpop.f32.mrb[28].mxu0 }
 0xc03   :  { %v1032_v52 = vadd.f32 %v1026_v51, %v209_v46  ;;  %v3216_v53 = vpop.f32.mrb[29].mxu0 }
 0xc04   :  { %v1029_v54 = vpop.f32.mrb[30].mxu0 }
 0xc05   :  { %3540 = vtanh.f32 %v1032_v52  ;;  %v3217_v55 = vpop.f32.mrb[31].mxu0  ;;  %v2916_v60 = vmul.f32 -1.442695, %v1032_v52 }
 0xc06   :  { %3542 = vpow2.f32 %v2914_v59 }
 0xc07   :  { %3544 = vpow2.f32 %v2916_v60 }
 0xc0a   :  { %v3539_v56 = vpop.eup %3538 }
 0xc0b   :  { %977 = vrot.lane.b32.xlu0 %v3539_v56, %s3735_s28 }
 0xc0f   :  { %v3541_v58 = vpop.eup %3540 }
 0xc10   :  { %1042 = vrot.lane.b32.xlu1 %v3541_v58, %s3735_s28  ;;  %v3543_v61 = vpop.eup %3542 }
 0xc11   :  { %v971_v62 = vadd.f32 1.0, %v3543_v61  ;;  %v3545_v63 = vpop.eup %3544 }
 0xc12   :  { %v1036_v48 = vadd.f32 1.0, %v3545_v63 }
 0xc13   :  { %3546 = vrcp.f32 %v971_v62 }
 0xc14   :  { %3548 = vrcp.f32 %v1036_v48 }
 0xc1d   :  { %v3547_v16 = vpop.eup %3546 }
 0xc1e   :  { %v3549_v4 = vpop.eup %3548  ;;  %v975_v7 = vmul.f32 %v3547_v16, %v4052_v20 }
 0xc1f   :  { %v1040_v11 = vmul.f32 %v3549_v4, %v4054_v21 }
 0xc7d   :  { %v978_v1 = vpop.permute.xlu0 %977 }
 0xc7e   :  { %v980_v2 = vmul.f32 %v3547_v16, %v978_v1 }
 0xc80   :  { %982 = vrot.lane.b32.xlu0 %v980_v2, %s3735_s28 }
 0xc82   :  { %v1043_v5 = vpop.permute.xlu1 %1042 }
 0xc83   :  { %v1045_v6 = vmul.f32 %v3549_v4, %v1043_v5 }
 0xc85   :  { %1047 = vrot.lane.b32.xlu1 %v1045_v6, %s3735_s28 }
 0xcf2   :  { %v983_v8 = vpop.permute.xlu0 %982 }
 0xcf3   :  { %v4091_v9 = vadd.f32 %v983_v8, %v975_v7 }
 0xcf5   :  { %3550 = vtanh.f32 %v4091_v9 }
 0xcf7   :  { %v1048_v13 = vpop.permute.xlu1 %1047 }
 0xcf8   :  { %v4095_v14 = vadd.f32 %v1048_v13, %v1040_v11 }
 0xcfa   :  { %3552 = vtanh.f32 %v4095_v14 }
 0xcff   :  { %v3551_v15 = vpop.eup %3550 }
 0xd00   :  { %988 = vrot.lane.b32.xlu0 %v3551_v15, %s3735_s28 }
 0xd04   :  { %v3553_v17 = vpop.eup %3552 }
 0xd05   :  { %1053 = vrot.lane.b32.xlu1 %v3553_v17, %s3735_s28 }
 0xd72   :  { %v989_v18 = vpop.permute.xlu0 %988 }
 0xd73   :  { %v991_v19 = vmul.f32 %v3547_v16, %v989_v18 }
 0xd75   :  { %v1058_v20 = vpack.c.bf16 %v991_v19, %v991_v19 }
 0xd77   :  { %1060 = vrot.lane.b32.xlu0 %v1058_v20, %s3736_s30  ;;  %v1054_v22 = vpop.permute.xlu1 %1053 }
 0xd78   :  { %v1056_v24 = vmul.f32 %v3549_v4, %v1054_v22 }
 0xd7a   :  { %v1057_v25 = vpack.c.bf16 %v1056_v24, %v1056_v24 }
 0xd7c   :  { %1106 = vrot.lane.b32.xlu1 %v1057_v25, %s3736_s30 }
 0xde9   :  { %v1061_v21 = vpop.permute.xlu0 %1060 }
 0xdea   :  { %3223 = vmatmul.mubr.msk.bf16.vlgmr.msra.gmra.mrb[28].mxu1 %vm235_vm3, %v1061_v21  ;;  %v217_v21 = vadd.f32 %v3937_v47, %v3871_v12 }
 0xdeb   :  { %3235 = vmatpush3.bf16.msra.mxu1 %v3840_v3  ;;  %3238 = vmatprep.mubr.msk.bf16.mxu1 %vm3733_vm0, %v3732_v0 }
 0xdec   :  { %3236 = vmatprep.subr.bf16.mxu1 %v3732_v0 }
 0xdee   :  { %v1107_v23 = vpop.permute.xlu1 %1106 }
 0xdef   :  { %3237 = vmatpush3.bf16.msra.mxu1 %v3858_v10  ;;  %3231 = vmatmul.mubr.msk.bf16.vlgmr.msra.gmra.mrb[32].mxu0 %vm235_vm3, %v1107_v23 }
 0xdf0   :  { %3250 = vmatprep.subr.bf16.mxu1 %v3732_v0  ;;  %3243 = vmatpush3.bf16.msra.mxu0 %v3888_v33 }
 0xdf1   :  { %3244 = vmatprep.subr.bf16.mxu0 %v3732_v0  ;;  %3246 = vmatprep.mubr.msk.bf16.mxu0 %vm3733_vm0, %v3732_v0 }
 0xdf2   :  { %3239 = vmatmul.mubr.msk.bf16.vlgmr.msra.gmra.mrb[32].mxu1 %vm235_vm3, %v1107_v23 }
 0xdf3   :  { %3251 = vmatpush3.bf16.msra.mxu1 %v3893_v34  ;;  %3254 = vmatprep.mubr.msk.bf16.mxu1 %vm3733_vm0, %v3732_v0 }
 0xdf4   :  { %3252 = vmatprep.subr.bf16.mxu1 %v3732_v0  ;;  %3245 = vmatpush3.bf16.msra.mxu0 %v3909_v39 }
 0xdf5   :  { %3258 = vmatprep.subr.bf16.mxu0 %v3732_v0 }
 0xdf7   :  { %3253 = vmatpush3.bf16.msra.mxu1 %v3917_v41 }
 0xdf8   :  { %3266 = vmatprep.subr.bf16.mxu1 %v3732_v0 }
 0xebd   :  { %v1099_v28 = vpop.f32.mrb[28].mxu1 }
 0xebe   :  { %v3224_v26 = vpop.f32.mrb[29].mxu1 }
 0xebf   :  { %v1102_v29 = vpop.f32.mrb[30].mxu1 }
 0xec0   :  { %v3225_v31 = vpop.f32.mrb[31].mxu1 }
 0xec2   :  { %v1145_v30 = vpop.f32.mrb[32].mxu0 }
 0xec3   :  { %v1146_v35 = vadd.f32 %v1145_v30, %v1099_v28  ;;  %v3232_v36 = vpop.f32.mrb[33].mxu0 }
 0xec4   :  { %v1148_v32 = vpop.f32.mrb[34].mxu0 }
 0xec5   :  { %v1151_v27 = vadd.f32 %v3964_v57, %v1146_v35  ;;  %v1210_v38 = vpop.f32.mrb[32].mxu1  ;;  %v3233_v40 = vpop.f32.mrb[35].mxu0 }
 0xec6   :  { %v1216_v42 = vadd.f32 %v1210_v38, %v212_v37  ;;  %v3240_v43 = vpop.f32.mrb[33].mxu1 }
 0xec7   :  { %3554 = vtanh.f32 %v1151_v27  ;;  %v1213_v44 = vpop.f32.mrb[34].mxu1  ;;  %v2919_v52 = vmul.f32 -1.442695, %v1151_v27 }
 0xec8   :  { %3556 = vtanh.f32 %v1216_v42  ;;  %v3241_v45 = vpop.f32.mrb[35].mxu1  ;;  %v2921_v53 = vmul.f32 -1.442695, %v1216_v42 }
 0xec9   :  { %3558 = vpow2.f32 %v2919_v52 }
 0xeca   :  { %3560 = vpow2.f32 %v2921_v53 }
 0xed1   :  { %v3555_v46 = vpop.eup %3554 }
 0xed2   :  { %v3557_v51 = vpop.eup %3556  ;;  %1161 = vrot.lane.b32.xlu0 %v3555_v46, %s3735_s28 }
 0xed3   :  { %1226 = vrot.lane.b32.xlu1 %v3557_v51, %s3735_s28  ;;  %v3559_v50 = vpop.eup %3558 }
 0xed4   :  { %v3561_v54 = vpop.eup %3560  ;;  %v1155_v55 = vadd.f32 1.0, %v3559_v50 }
 0xed5   :  { %v1220_v56 = vadd.f32 1.0, %v3561_v54 }
 0xed6   :  { %3562 = vrcp.f32 %v1155_v55 }
 0xed7   :  { %3564 = vrcp.f32 %v1220_v56 }
 0xee0   :  { %v3563_v58 = vpop.eup %3562 }
 0xee1   :  { %v3565_v60 = vpop.eup %3564  ;;  %v1159_v48 = vmul.f32 %v3563_v58, %v4091_v9 }
 0xee2   :  { %v1224_v16 = vmul.f32 %v3565_v60, %v4095_v14 }
 0xf44   :  { %v1162_v59 = vpop.permute.xlu0 %1161 }
 0xf45   :  { %v1227_v61 = vpop.permute.xlu1 %1226  ;;  %v1164_v62 = vmul.f32 %v3563_v58, %v1162_v59 }
 0xf46   :  { %v1229_v63 = vmul.f32 %v3565_v60, %v1227_v61 }
 0xf47   :  { %1166 = vrot.lane.b32.xlu0 %v1164_v62, %s3735_s28 }
 0xf48   :  { %1231 = vrot.lane.b32.xlu1 %v1229_v63, %s3735_s28 }
 0xfb9   :  { %v1167_v1 = vpop.permute.xlu0 %1166 }
 0xfba   :  { %v1232_v2 = vpop.permute.xlu1 %1231  ;;  %v4132_v4 = vadd.f32 %v1167_v1, %v1159_v48  ;;  %v3674_v48 = vld [vmem:[%s4531_s2] sm:$0xff]   ;;  %v3675_v1 = vld [vmem:[%s4531_s2 + $0x8] sm:$0xff]  }
 0xfbb   :  { %v4134_v5 = vadd.f32 %v1232_v2, %v1224_v16  ;;  %v3676_v2 = vld [vmem:[%s4534_s5] sm:$0xff]  }
 0xfbc   :  { %3566 = vtanh.f32 %v4132_v4 }
 0xfbd   :  { %3568 = vtanh.f32 %v4134_v5 }
 0xfc6   :  { %v3567_v6 = vpop.eup %3566 }
 0xfc7   :  { %v3569_v7 = vpop.eup %3568  ;;  %1172 = vrot.lane.b32.xlu0 %v3567_v6, %s3735_s28  ;;  %v3679_v6 = vld [vmem:[%s4533_s4 + $0x8] sm:$0xff]  }
 0xfc8   :  { %1237 = vrot.lane.b32.xlu1 %v3569_v7, %s3735_s28 }
0x1039   :  { %v1173_v8 = vpop.permute.xlu0 %1172 }
0x103a   :  { %v1238_v9 = vpop.permute.xlu1 %1237  ;;  %v1175_v11 = vmul.f32 %v3563_v58, %v1173_v8 }
0x103b   :  { %v1240_v13 = vmul.f32 %v3565_v60, %v1238_v9 }
0x103c   :  { %v1242_v14 = vpack.c.bf16 %v1175_v11, %v1175_v11 }
0x103d   :  { %v1241_v15 = vpack.c.bf16 %v1240_v13, %v1240_v13 }
0x103e   :  { %1244 = vrot.lane.b32.xlu0 %v1242_v14, %s3736_s30 }
0x103f   :  { %1290 = vrot.lane.b32.xlu1 %v1241_v15, %s3736_s30 }
0x10b0   :  { %v1245_v17 = vpop.permute.xlu0 %1244 }
0x10b1   :  { %v1291_v18 = vpop.permute.xlu1 %1290  ;;  %3247 = vmatmul.mubr.msk.bf16.vlgmr.msra.gmra.mrb[36].mxu0 %vm235_vm3, %v1245_v17  ;;  %v3680_v17 = vld [vmem:[%s4532_s3] ss:$0 sm:$0xff] }
0x10b2   :  { %3255 = vmatmul.mubr.msk.bf16.vlgmr.msra.gmra.mrb[36].mxu1 %vm235_vm3, %v1291_v18  ;;  %3259 = vmatpush3.bf16.msra.mxu0 %v3840_v3 }
0x10b3   :  { %3260 = vmatprep.subr.bf16.mxu0 %v3732_v0  ;;  %3262 = vmatprep.mubr.msk.bf16.mxu0 %vm3733_vm0, %v3732_v0 }
0x10b4   :  { %3267 = vmatpush3.bf16.msra.mxu1 %v3888_v33  ;;  %3270 = vmatprep.mubr.msk.bf16.mxu1 %vm3733_vm0, %v3732_v0 }
0x10b5   :  { %3268 = vmatprep.subr.bf16.mxu1 %v3732_v0 }
0x10b6   :  { %3261 = vmatpush3.bf16.msra.mxu0 %v3858_v10 }
0x10b7   :  { %3274 = vmatprep.subr.bf16.mxu0 %v3732_v0 }
0x10b8   :  { %3269 = vmatpush3.bf16.msra.mxu1 %v3909_v39 }
0x10b9   :  { %3263 = vmatmul.mubr.msk.bf16.vlgmr.msra.gmra.mrb[40].mxu0 %vm235_vm3, %v1291_v18  ;;  %3282 = vmatprep.subr.bf16.mxu1 %v3732_v0  ;;  %v220_v18 = vadd.f32 %v3680_v17, %v3941_v49 }
0x10ba   :  { %3275 = vmatpush3.bf16.msra.mxu0 %v3893_v34  ;;  %3278 = vmatprep.mubr.msk.bf16.mxu0 %vm3733_vm0, %v3732_v0 }
0x10bb   :  { %3276 = vmatprep.subr.bf16.mxu0 %v3732_v0 }
0x10be   :  { %3277 = vmatpush3.bf16.msra.mxu0 %v3917_v41 }
0x10bf   :  { %3290 = vmatprep.subr.bf16.mxu0 %v3732_v0 }
0x1184   :  { %v1283_v3 = vpop.f32.mrb[36].mxu0 }
0x1185   :  { %v1329_v10 = vpop.f32.mrb[36].mxu1  ;;  %v3248_v33 = vpop.f32.mrb[37].mxu0 }
0x1186   :  { %v1330_v19 = vadd.f32 %v1329_v10, %v1283_v3  ;;  %v3256_v39 = vpop.f32.mrb[37].mxu1  ;;  %v1286_v20 = vpop.f32.mrb[38].mxu0 }
0x1187   :  { %v1332_v22 = vpop.f32.mrb[38].mxu1  ;;  %v3249_v24 = vpop.f32.mrb[39].mxu0 }
0x1188   :  { %v1335_v25 = vadd.f32 %v3964_v57, %v1330_v19  ;;  %v3257_v34 = vpop.f32.mrb[39].mxu1 }
0x118a   :  { %3570 = vtanh.f32 %v1335_v25  ;;  %v2924_v35 = vmul.f32 -1.442695, %v1335_v25 }
0x118c   :  { %v1394_v23 = vpop.f32.mrb[40].mxu0 }
0x118d   :  { %v1400_v28 = vadd.f32 %v1394_v23, %v217_v21  ;;  %v3264_v41 = vpop.f32.mrb[41].mxu0 }
0x118e   :  { %v1397_v26 = vpop.f32.mrb[42].mxu0 }
0x118f   :  { %3572 = vtanh.f32 %v1400_v28  ;;  %v3265_v29 = vpop.f32.mrb[43].mxu0  ;;  %v2926_v36 = vmul.f32 -1.442695, %v1400_v28 }
0x1190   :  { %3574 = vpow2.f32 %v2924_v35 }
0x1191   :  { %3576 = vpow2.f32 %v2926_v36 }
0x1194   :  { %v3571_v31 = vpop.eup %3570 }
0x1195   :  { %1345 = vrot.lane.b32.xlu0 %v3571_v31, %s3735_s28 }
0x1199   :  { %v3573_v30 = vpop.eup %3572 }
0x119a   :  { %1410 = vrot.lane.b32.xlu1 %v3573_v30, %s3735_s28  ;;  %v3575_v37 = vpop.eup %3574 }
0x119b   :  { %v1339_v32 = vadd.f32 1.0, %v3575_v37  ;;  %v3577_v27 = vpop.eup %3576 }
0x119c   :  { %v1404_v12 = vadd.f32 1.0, %v3577_v27 }
0x119d   :  { %3578 = vrcp.f32 %v1339_v32 }
0x119e   :  { %3580 = vrcp.f32 %v1404_v12 }
0x11a7   :  { %v3579_v47 = vpop.eup %3578 }
0x11a8   :  { %v3581_v42 = vpop.eup %3580  ;;  %v1343_v45 = vmul.f32 %v3579_v47, %v4132_v4  ;;  %v3677_v4 = vld [vmem:[%s4533_s4] sm:$0xff]  }
0x11a9   :  { %v1408_v52 = vmul.f32 %v3581_v42, %v4134_v5  ;;  %v3678_v5 = vld [vmem:[%s4534_s5 + $0x8] sm:$0xff]  }
0x1207   :  { %v1346_v38 = vpop.permute.xlu0 %1345 }
0x1208   :  { %v1348_v40 = vmul.f32 %v3579_v47, %v1346_v38 }
0x120a   :  { %1350 = vrot.lane.b32.xlu0 %v1348_v40, %s3735_s28 }
0x120c   :  { %v1411_v43 = vpop.permute.xlu1 %1410 }
0x120d   :  { %v1413_v44 = vmul.f32 %v3581_v42, %v1411_v43 }
0x120f   :  { %1415 = vrot.lane.b32.xlu1 %v1413_v44, %s3735_s28 }
0x127c   :  { %v1351_v46 = vpop.permute.xlu0 %1350 }
0x127d   :  { %v4171_v51 = vadd.f32 %v1351_v46, %v1343_v45 }
0x127f   :  { %3582 = vtanh.f32 %v4171_v51 }
0x1281   :  { %v1416_v53 = vpop.permute.xlu1 %1415 }
0x1282   :  { %v4175_v50 = vadd.f32 %v1416_v53, %v1408_v52  ;;  %v85_v53 = vld [vmem:[%s4536_s7] sm:$0xf] }
0x1284   :  { %3584 = vtanh.f32 %v4175_v50 }
0x1289   :  { %v3583_v54 = vpop.eup %3582 }
0x128a   :  { %1356 = vrot.lane.b32.xlu0 %v3583_v54, %s3735_s28 }
0x128e   :  { %v3585_v55 = vpop.eup %3584 }
0x128f   :  { %1421 = vrot.lane.b32.xlu1 %v3585_v55, %s3735_s28  ;;  %v4245_v55 = vsel %vm154_vm1, %v85_v53, 0 }
0x12fc   :  { %v1357_v56 = vpop.permute.xlu0 %1356 }
0x12fd   :  { %v1359_v58 = vmul.f32 %v3579_v47, %v1357_v56 }
0x12ff   :  { %v1426_v59 = vpack.c.bf16 %v1359_v58, %v1359_v58  ;;  %v4253_v58 = vld [vmem:[%s4537_s8 + $0x8] sm:$0xff]  }
0x1301   :  { %1428 = vrot.lane.b32.xlu0 %v1426_v59, %s3736_s30  ;;  %v1422_v60 = vpop.permute.xlu1 %1421  ;;  %v3681_v59 = vld [vmem:[%s4529_s0 + $0x38] sm:$0xff] }
0x1302   :  { %v1424_v61 = vmul.f32 %v3581_v42, %v1422_v60  ;;  %v1728_v60 = vpack.c.bf16 %v3681_v59, %v3681_v59 }
0x1304   :  { %v1425_v62 = vpack.c.bf16 %v1424_v61, %v1424_v61 }
0x1306   :  { %1474 = vrot.lane.b32.xlu1 %v1425_v62, %s3736_s30 }
0x1373   :  { %v1429_v63 = vpop.permute.xlu0 %1428 }
0x1374   :  { %3271 = vmatmul.mubr.msk.bf16.vlgmr.msra.gmra.mrb[40].mxu1 %vm235_vm3, %v1429_v63 }
0x1375   :  { %3283 = vmatpush3.bf16.msra.mxu1 %v3674_v48  ;;  %3286 = vmatprep.mubr.msk.bf16.mxu1 %vm3733_vm0, %v3732_v0 }
0x1376   :  { %3284 = vmatprep.subr.bf16.mxu1 %v3732_v0 }
0x1378   :  { %v1475_v16 = vpop.permute.xlu1 %1474 }
0x1379   :  { %3285 = vmatpush3.bf16.msra.mxu1 %v3675_v1  ;;  %3279 = vmatmul.mubr.msk.bf16.vlgmr.msra.gmra.mrb[44].mxu0 %vm235_vm3, %v1475_v16 }
0x137a   :  { %3298 = vmatprep.subr.bf16.mxu1 %v3732_v0  ;;  %3291 = vmatpush3.bf16.msra.mxu0 %v3676_v2 }
0x137b   :  { %3292 = vmatprep.subr.bf16.mxu0 %v3732_v0  ;;  %3294 = vmatprep.mubr.msk.bf16.mxu0 %vm3733_vm0, %v3732_v0 }
0x137c   :  { %3287 = vmatmul.mubr.msk.bf16.vlgmr.msra.gmra.mrb[44].mxu1 %vm235_vm3, %v1475_v16 }
0x137d   :  { %3299 = vmatpush3.bf16.msra.mxu1 %v3677_v4  ;;  %3302 = vmatprep.mubr.msk.bf16.mxu1 %vm3733_vm0, %v3732_v0 }
0x137e   :  { %3300 = vmatprep.subr.bf16.mxu1 %v3732_v0  ;;  %3293 = vmatpush3.bf16.msra.mxu0 %v3678_v5  ;;  %v3682_v5 = vld [vmem:[%s4535_s6] ss:$0 sm:$0xff] }
0x137f   :  { %3306 = vmatprep.subr.bf16.mxu0 %v3732_v0 }
0x1381   :  { %3301 = vmatpush3.bf16.msra.mxu1 %v3679_v6 }
0x1382   :  { %3314 = vmatprep.subr.bf16.mxu1 %v3732_v0 }
0x1447   :  { %v1467_v7 = vpop.f32.mrb[40].mxu1 }
0x1448   :  { %v3272_v8 = vpop.f32.mrb[41].mxu1 }
0x1449   :  { %v1470_v9 = vpop.f32.mrb[42].mxu1 }
0x144a   :  { %v3273_v11 = vpop.f32.mrb[43].mxu1  ;;  %v4279_v9 = vld [vmem:[%s4538_s9] ss:$0 sm:$0xff] }
0x144c   :  { %v1513_v13 = vpop.f32.mrb[44].mxu0 }
0x144d   :  { %v1514_v14 = vadd.f32 %v1513_v13, %v1467_v7  ;;  %v3280_v15 = vpop.f32.mrb[45].mxu0 }
0x144e   :  { %v1516_v3 = vpop.f32.mrb[46].mxu0 }
0x144f   :  { %v1519_v10 = vadd.f32 %v3964_v57, %v1514_v14  ;;  %v1578_v33 = vpop.f32.mrb[44].mxu1  ;;  %v3281_v19 = vpop.f32.mrb[47].mxu0 }
0x1450   :  { %v1584_v39 = vadd.f32 %v1578_v33, %v220_v18  ;;  %v3288_v20 = vpop.f32.mrb[45].mxu1 }
0x1451   :  { %3586 = vtanh.f32 %v1519_v10  ;;  %v1581_v22 = vpop.f32.mrb[46].mxu1  ;;  %v2929_v21 = vmul.f32 -1.442695, %v1519_v10 }
0x1452   :  { %3588 = vtanh.f32 %v1584_v39  ;;  %v3289_v24 = vpop.f32.mrb[47].mxu1  ;;  %v2931_v23 = vmul.f32 -1.442695, %v1584_v39 }
0x1453   :  { %3590 = vpow2.f32 %v2929_v21 }
0x1454   :  { %3592 = vpow2.f32 %v2931_v23 }
0x145b   :  { %v3587_v25 = vpop.eup %3586 }
0x145c   :  { %v3589_v34 = vpop.eup %3588  ;;  %1529 = vrot.lane.b32.xlu0 %v3587_v25, %s3735_s28 }
0x145d   :  { %1594 = vrot.lane.b32.xlu1 %v3589_v34, %s3735_s28  ;;  %v3591_v49 = vpop.eup %3590 }
0x145e   :  { %v3593_v57 = vpop.eup %3592  ;;  %v1523_v28 = vadd.f32 1.0, %v3591_v49 }
0x145f   :  { %v1588_v41 = vadd.f32 1.0, %v3593_v57 }
0x1460   :  { %3594 = vrcp.f32 %v1523_v28 }
0x1461   :  { %3596 = vrcp.f32 %v1588_v41 }
0x146a   :  { %v3595_v26 = vpop.eup %3594 }
0x146b   :  { %v3597_v31 = vpop.eup %3596  ;;  %v1527_v37 = vmul.f32 %v3595_v26, %v4171_v51 }
0x146c   :  { %v1592_v32 = vmul.f32 %v3597_v31, %v4175_v50  ;;  %v4242_v50 = vld [vmem:[%s4537_s8] sm:$0xff]  }
0x14ce   :  { %v1530_v29 = vpop.permute.xlu0 %1529 }
0x14cf   :  { %v1595_v30 = vpop.permute.xlu1 %1594  ;;  %v1532_v35 = vmul.f32 %v3595_v26, %v1530_v29 }
0x14d0   :  { %v1597_v36 = vmul.f32 %v3597_v31, %v1595_v30 }
0x14d1   :  { %1534 = vrot.lane.b32.xlu0 %v1532_v35, %s3735_s28 }
0x14d2   :  { %1599 = vrot.lane.b32.xlu1 %v1597_v36, %s3735_s28 }
0x1543   :  { %v1535_v27 = vpop.permute.xlu0 %1534 }
0x1544   :  { %v1600_v12 = vpop.permute.xlu1 %1599  ;;  %v4226_v47 = vadd.f32 %v1535_v27, %v1527_v37  ;;  %v4297_v27 = vld [vmem:[%s4540_s11] sm:$0xff]  }
0x1545   :  { %v4228_v38 = vadd.f32 %v1600_v12, %v1592_v32  ;;  %v4304_v12 = vld [vmem:[%s4540_s11 + $0x8] sm:$0xff]  }
0x1546   :  { %3598 = vtanh.f32 %v4226_v47 }
0x1547   :  { %3600 = vtanh.f32 %v4228_v38 }
0x1550   :  { %v3599_v40 = vpop.eup %3598 }
0x1551   :  { %v3601_v42 = vpop.eup %3600  ;;  %1540 = vrot.lane.b32.xlu0 %v3599_v40, %s3735_s28  ;;  %v4319_v40 = vld [vmem:[%s4539_s10 + $0x8] sm:$0xff]  }
0x1552   :  { %1605 = vrot.lane.b32.xlu1 %v3601_v42, %s3735_s28 }
0x15c3   :  { %v1541_v43 = vpop.permute.xlu0 %1540 }
0x15c4   :  { %v1606_v44 = vpop.permute.xlu1 %1605  ;;  %v1543_v45 = vmul.f32 %v3595_v26, %v1541_v43 }
0x15c5   :  { %v1608_v46 = vmul.f32 %v3597_v31, %v1606_v44 }
0x15c6   :  { %v1610_v51 = vpack.c.bf16 %v1543_v45, %v1543_v45 }
0x15c7   :  { %v1609_v52 = vpack.c.bf16 %v1608_v46, %v1608_v46 }
0x15c8   :  { %1612 = vrot.lane.b32.xlu0 %v1610_v51, %s3736_s30 }
0x15c9   :  { %1658 = vrot.lane.b32.xlu1 %v1609_v52, %s3736_s30 }
0x163a   :  { %v1613_v54 = vpop.permute.xlu0 %1612 }
0x163b   :  { %v1659_v56 = vpop.permute.xlu1 %1658  ;;  %3295 = vmatmul.mubr.msk.bf16.vlgmr.msra.gmra.mrb[48].mxu0 %vm235_vm3, %v1613_v54 }
0x163c   :  { %3303 = vmatmul.mubr.msk.bf16.vlgmr.msra.gmra.mrb[48].mxu1 %vm235_vm3, %v1659_v56  ;;  %3307 = vmatpush3.bf16.msra.mxu0 %v4242_v50 }
0x163d   :  { %3315 = vmatpush3.bf16.msra.mxu1 %v4245_v55  ;;  %3308 = vmatprep.subr.bf16.mxu0 %v3732_v0 }
0x163e   :  { %3310 = vmatprep.mubr.msk.bf16.mxu0 %vm3733_vm0, %v3732_v0  ;;  %3316 = vmatprep.mubr.msk.bf16.mxu1 %vm3733_vm0, %v3732_v0 }
0x163f   :  { %3328 = vmatprep.subr.bf16.mxu1 %v3732_v0 }
0x1640   :  { %3309 = vmatpush3.bf16.msra.mxu0 %v4253_v58 }
0x1641   :  { %3320 = vmatprep.subr.bf16.mxu0 %v3732_v0 }
0x1643   :  { %3311 = vmatmul.mubr.msk.bf16.vlgmr.msra.gmra.mrb[52].mxu0 %vm235_vm3, %v1659_v56 }
0x1644   :  { %3317 = vmatmul.mubr.msk.bf16.vlgmr.msra.gmra.mrb[52].mxu1 %vm141_vm2, %v1728_v60  ;;  %3324 = vmatprep.mubr.msk.bf16.mxu0 %vm3733_vm0, %v3732_v0 }
0x1645   :  { %3332 = vmatprep.mubr.msk.bf16.mxu1 %vm3733_vm0, %v3732_v0  ;;  %3321 = vmatpush3.bf16.msra.mxu0 %v4297_v27 }
0x1646   :  { %3322 = vmatprep.subr.bf16.mxu0 %v3732_v0 }
0x1649   :  { %3323 = vmatpush3.bf16.msra.mxu0 %v4304_v12 }
0x164a   :  { %3336 = vmatprep.subr.bf16.mxu0 %v3732_v0 }
0x170e   :  { %v1651_v61 = vpop.f32.mrb[48].mxu0 }
0x170f   :  { %v1697_v62 = vpop.f32.mrb[48].mxu1  ;;  %v3296_v63 = vpop.f32.mrb[49].mxu0 }
0x1710   :  { %v1698_v48 = vadd.f32 %v1697_v62, %v1651_v61  ;;  %v3304_v16 = vpop.f32.mrb[49].mxu1  ;;  %v1654_v1 = vpop.f32.mrb[50].mxu0  ;;  %v4346_v61 = vld [vmem:[%s4541_s12] ss:$0 sm:$0xff] }
0x1711   :  { %v1700_v2 = vpop.f32.mrb[50].mxu1  ;;  %v3297_v4 = vpop.f32.mrb[51].mxu0 }
0x1712   :  { %v1703_v6 = vadd.f32 %v3682_v5, %v1698_v48  ;;  %v3305_v7 = vpop.f32.mrb[51].mxu1 }
0x1714   :  { %3602 = vtanh.f32 %v1703_v6  ;;  %v2934_v20 = vmul.f32 -1.442695, %v1703_v6 }
0x1716   :  { %v1775_v8 = vpop.f32.mrb[52].mxu0 }
0x1717   :  { %v1821_v11 = vpop.f32.mrb[52].mxu1  ;;  %v3312_v13 = vpop.f32.mrb[53].mxu0 }
0x1718   :  { %v1822_v14 = vadd.f32 %v1821_v11, %v1775_v8  ;;  %v3318_v15 = vpop.f32.mrb[53].mxu1  ;;  %v1778_v17 = vpop.f32.mrb[54].mxu0 }
0x1719   :  { %v1824_v18 = vpop.f32.mrb[54].mxu1  ;;  %v3313_v3 = vpop.f32.mrb[55].mxu0 }
0x171a   :  { %v1827_v10 = vadd.f32 %v4279_v9, %v1822_v14  ;;  %v3319_v33 = vpop.f32.mrb[55].mxu1 }
0x171c   :  { %3604 = vtanh.f32 %v1827_v10  ;;  %v2939_v22 = vmul.f32 -1.442695, %v1827_v10 }
0x171d   :  { %3606 = vpow2.f32 %v2934_v20 }
0x171e   :  { %v3603_v19 = vpop.eup %3602  ;;  %3608 = vpow2.f32 %v2939_v22 }
0x171f   :  { %1713 = vrot.lane.b32.xlu0 %v3603_v19, %s3735_s28  ;;  %v4358_v19 = vld [vmem:[%s4542_s13] sm:$0xff]  }
0x1726   :  { %v3605_v39 = vpop.eup %3604 }
0x1727   :  { %1837 = vrot.lane.b32.xlu1 %v3605_v39, %s3735_s28  ;;  %v3607_v24 = vpop.eup %3606  ;;  %v4364_v39 = vld [vmem:[%s4542_s13 + $0x8] sm:$0xff]  }
0x1728   :  { %v1707_v25 = vadd.f32 1.0, %v3607_v24  ;;  %v3609_v34 = vpop.eup %3608 }
0x1729   :  { %v1831_v21 = vadd.f32 1.0, %v3609_v34 }
0x172a   :  { %3610 = vrcp.f32 %v1707_v25 }
0x172b   :  { %3612 = vrcp.f32 %v1831_v21  ;;  %v4386_v21 = vld [vmem:[%s4543_s14] ss:$0 sm:$0xff]  ;;  %s3737_s14 = smov [#allocation5]  }
0x172c   :  { %s2870_s4 = sshll.u32 %s3737_s14, 4  ;;  %s2871_s4 = int_to_ptr.vmem [resolvable:$true] %s2870_s4 }
0x172d   :  { %p3710_p9 = scmp.lt.s32.totalorder %s2871_s4, %s2871_s4 }
0x1734   :  { %v3611_v23 = vpop.eup %3610 }
0x1735   :  { %v3613_v28 = vpop.eup %3612  ;;  %v1711_v29 = vmul.f32 %v3611_v23, %v4226_v47 }
0x1736   :  { %v1835_v35 = vmul.f32 %v3613_v28, %v4228_v38  ;;  %v4313_v38 = vld [vmem:[%s4539_s10] sm:$0xff]  }
0x1737   :  { %3329 = vmatpush3.bf16.msra.mxu1 %v4313_v38 }
0x1738   :  { %3330 = vmatprep.subr.bf16.mxu1 %v3732_v0 }
0x173b   :  { %3331 = vmatpush3.bf16.msra.mxu1 %v4319_v40 }
0x173c   :  { %3344 = vmatprep.subr.bf16.mxu1 %v3732_v0 }
0x1791   :  { %v1714_v49 = vpop.permute.xlu0 %1713 }
0x1792   :  { %v1716_v57 = vmul.f32 %v3611_v23, %v1714_v49 }
0x1794   :  { %1718 = vrot.lane.b32.xlu0 %v1716_v57, %s3735_s28 }
0x1799   :  { %v1838_v41 = vpop.permute.xlu1 %1837 }
0x179a   :  { %v1840_v26 = vmul.f32 %v3613_v28, %v1838_v41 }
0x179c   :  { %1842 = vrot.lane.b32.xlu1 %v1840_v26, %s3735_s28 }
0x1806   :  { %v1719_v31 = vpop.permute.xlu0 %1718 }
0x1807   :  { %v4287_v30 = vadd.f32 %v1719_v31, %v1711_v29 }
0x1809   :  { %3614 = vtanh.f32 %v4287_v30 }
0x180e   :  { %v1843_v36 = vpop.permute.xlu1 %1842 }
0x180f   :  { %v4291_v37 = vadd.f32 %v1843_v36, %v1835_v35 }
0x1811   :  { %3616 = vtanh.f32 %v4291_v37 }
0x1813   :  { %v3615_v32 = vpop.eup %3614 }
0x1814   :  { %1724 = vrot.lane.b32.xlu0 %v3615_v32, %s3735_s28 }
0x181b   :  { %v3617_v47 = vpop.eup %3616 }
0x181c   :  { %1848 = vrot.lane.b32.xlu1 %v3617_v47, %s3735_s28 }
0x1886   :  { %v1725_v42 = vpop.permute.xlu0 %1724 }
0x1887   :  { %v1727_v43 = vmul.f32 %v3611_v23, %v1725_v42 }
0x1889   :  { %v1853_v44 = vpack.c.bf16 %v1727_v43, %v1727_v43 }
0x188b   :  { %1855 = vrot.lane.b32.xlu0 %v1853_v44, %s3736_s30 }
0x188e   :  { %v1849_v45 = vpop.permute.xlu1 %1848 }
0x188f   :  { %v1851_v46 = vmul.f32 %v3613_v28, %v1849_v45 }
0x1891   :  { %v1852_v51 = vpack.c.bf16 %v1851_v46, %v1851_v46 }
0x1893   :  { %1913 = vrot.lane.b32.xlu1 %v1852_v51, %s3736_s30 }
0x18fd   :  { %v1856_v52 = vpop.permute.xlu0 %1855 }
0x18fe   :  { %3325 = vmatmul.mubr.msk.bf16.vlgmr.msra.gmra.mrb[56].mxu0 %vm235_vm3, %v1856_v52 }
0x18ff   :  { %3340 = vmatprep.mubr.msk.bf16.mxu0 %vm3733_vm0, %v3732_v0  ;;  %3337 = vmatpush3.bf16.msra.mxu0 %v4358_v19 }
0x1900   :  { %3338 = vmatprep.subr.bf16.mxu0 %v3732_v0 }
0x1903   :  { %3339 = vmatpush3.bf16.msra.mxu0 %v4364_v39 }
0x1904   :  { %3352 = vmatprep.subr.bf16.mxu0 %v3732_v0 }
0x1905   :  { %v1914_v53 = vpop.permute.xlu1 %1913 }
0x1906   :  { %3333 = vmatmul.mubr.msk.bf16.vlgmr.msra.gmra.mrb[56].mxu1 %vm235_vm3, %v1914_v53 }
0x1907   :  { %3345 = vmatpush3.bf16.msra.mxu1 %v4242_v50  ;;  %3348 = vmatprep.mubr.msk.bf16.mxu1 %vm3733_vm0, %v3732_v0 }
0x1908   :  { %3346 = vmatprep.subr.bf16.mxu1 %v3732_v0 }
0x190b   :  { %3347 = vmatpush3.bf16.msra.mxu1 %v4253_v58 }
0x190c   :  { %3358 = vmatprep.subr.bf16.mxu1 %v3732_v0 }
0x190e   :  { %3349 = vmatmul.mubr.msk.bf16.vlgmr.msra.gmra.mrb[60].mxu1 %vm235_vm3, %v1914_v53 }
0x190f   :  { %3359 = vmatpush3.bf16.msra.mxu1 %v4297_v27  ;;  %3362 = vmatprep.mubr.msk.bf16.mxu1 %vm3733_vm0, %v3732_v0 }
0x1910   :  { %3360 = vmatprep.subr.bf16.mxu1 %v3732_v0 }
0x1913   :  { %3361 = vmatpush3.bf16.msra.mxu1 %v4304_v12 }
0x1914   :  { %3374 = vmatprep.subr.bf16.mxu1 %v3732_v0 }
0x19d1   :  { %v1906_v54 = vpop.f32.mrb[56].mxu0 }
0x19d2   :  { %v3326_v56 = vpop.f32.mrb[57].mxu0 }
0x19d3   :  { %v1909_v59 = vpop.f32.mrb[58].mxu0 }
0x19d4   :  { %v3327_v60 = vpop.f32.mrb[59].mxu0 }
0x19d9   :  { %v1964_v62 = vpop.f32.mrb[56].mxu1 }
0x19da   :  { %v1965_v63 = vadd.f32 %v1964_v62, %v1906_v54  ;;  %v3334_v48 = vpop.f32.mrb[57].mxu1 }
0x19db   :  { %v1967_v16 = vpop.f32.mrb[58].mxu1 }
0x19dc   :  { %v1970_v1 = vadd.f32 %v4346_v61, %v1965_v63  ;;  %v3335_v2 = vpop.f32.mrb[59].mxu1 }
0x19de   :  { %3618 = vtanh.f32 %v1970_v1  ;;  %v2946_v11 = vmul.f32 -1.442695, %v1970_v1 }
0x19e0   :  { %3620 = vpow2.f32 %v2946_v11 }
0x19e1   :  { %v2090_v4 = vpop.f32.mrb[60].mxu1 }
0x19e2   :  { %v3350_v5 = vpop.f32.mrb[61].mxu1 }
0x19e3   :  { %v2093_v6 = vpop.f32.mrb[62].mxu1 }
0x19e4   :  { %v3351_v7 = vpop.f32.mrb[63].mxu1 }
0x19e8   :  { %v3619_v8 = vpop.eup %3618 }
0x19e9   :  { %1980 = vrot.lane.b32.xlu0 %v3619_v8, %s3735_s28 }
0x19ea   :  { %v3621_v13 = vpop.eup %3620 }
0x19eb   :  { %v1974_v14 = vadd.f32 1.0, %v3621_v13 }
0x19ed   :  { %3622 = vrcp.f32 %v1974_v14 }
0x19f7   :  { %v3623_v15 = vpop.eup %3622 }
0x19f8   :  { %v1978_v3 = vmul.f32 %v3623_v15, %v4287_v30 }
0x1a5b   :  { %v1981_v17 = vpop.permute.xlu0 %1980 }
0x1a5c   :  { %v1983_v18 = vmul.f32 %v3623_v15, %v1981_v17 }
0x1a5e   :  { %1985 = vrot.lane.b32.xlu1 %v1983_v18, %s3735_s28 }
0x1ad0   :  { %v1986_v10 = vpop.permute.xlu1 %1985 }
0x1ad1   :  { %v4352_v33 = vadd.f32 %v1986_v10, %v1978_v3 }
0x1ad3   :  { %3624 = vtanh.f32 %v4352_v33 }
0x1add   :  { %v3625_v20 = vpop.eup %3624 }
0x1ade   :  { %1991 = vrot.lane.b32.xlu0 %v3625_v20, %s3735_s28 }
0x1b50   :  { %v1992_v22 = vpop.permute.xlu0 %1991 }
0x1b51   :  { %v1994_v24 = vmul.f32 %v3623_v15, %v1992_v22 }
0x1b53   :  { %v1995_v25 = vpack.c.bf16 %v1994_v24, %v1994_v24 }
0x1b55   :  { %1997 = vrot.lane.b32.xlu1 %v1995_v25, %s3736_s30 }
0x1bc7   :  { %v1998_v34 = vpop.permute.xlu1 %1997 }
0x1bc8   :  { %3341 = vmatmul.mubr.msk.bf16.vlgmr.msra.gmra.mrb[60].mxu0 %vm235_vm3, %v1998_v34  ;;  %3363 = vmatmul.mubr.msk.bf16.vlgmr.msra.gmra.mrb[64].mxu1 %vm235_vm3, %v1998_v34 }
0x1bc9   :  { %3353 = vmatpush3.bf16.msra.mxu0 %v4245_v55  ;;  %3354 = vmatprep.mubr.msk.bf16.mxu0 %vm3733_vm0, %v3732_v0 }
0x1bca   :  { %3366 = vmatprep.subr.bf16.mxu0 %v3732_v0  ;;  %3375 = vmatpush3.bf16.msra.mxu1 %v4358_v19 }
0x1bcb   :  { %3376 = vmatprep.subr.bf16.mxu1 %v3732_v0  ;;  %3378 = vmatprep.mubr.msk.bf16.mxu1 %vm3733_vm0, %v3732_v0 }
0x1bce   :  { %3377 = vmatpush3.bf16.msra.mxu1 %v4364_v39 }
0x1bcf   :  { %3390 = vmatprep.subr.bf16.mxu1 %v3732_v0 }
0x1c9b   :  { %v2048_v23 = vpop.f32.mrb[60].mxu0  ;;  %v2199_v49 = vpop.f32.mrb[64].mxu1 }
0x1c9c   :  { %v2049_v57 = vadd.f32 %v4386_v21, %v2048_v23  ;;  %v3342_v28 = vpop.f32.mrb[61].mxu0  ;;  %v3364_v41 = vpop.f32.mrb[65].mxu1 }
0x1c9d   :  { %v2051_v26 = vpop.f32.mrb[62].mxu0  ;;  %v2202_v29 = vpop.f32.mrb[66].mxu1 }
0x1c9e   :  { %2054 = vst.msk [vmem:[#allocation5] sm:$0xff] %vm141_vm2, %v2049_v57  ;;  %v2055_v31 = vpack.c.bf16 %v2049_v57, %v2049_v57  ;;  %v3343_v30 = vpop.f32.mrb[63].mxu0  ;;  %v3365_v35 = vpop.f32.mrb[67].mxu1 }
0x1ca0   :  { %3355 = vmatmul.mubr.msk.bf16.vlgmr.msra.gmra.mrb[64].mxu0 %vm141_vm2, %v2055_v31 }
0x1ca1   :  { %3367 = vmatpush3.bf16.msra.mxu0 %v4313_v38  ;;  %3370 = vmatprep.mubr.msk.bf16.mxu0 %vm3733_vm0, %v3732_v0 }
0x1ca2   :  { %3368 = vmatprep.subr.bf16.mxu0 %v3732_v0 }
0x1ca5   :  { %3369 = vmatpush3.bf16.msra.mxu0 %v4319_v40 }
0x1ca6   :  { %3382 = vmatprep.subr.bf16.mxu0 %v3732_v0 }
0x1d73   :  { %v2133_v36 = vpop.f32.mrb[64].mxu0 }
0x1d74   :  { %v2134_v32 = vadd.f32 %v2133_v36, %v2090_v4  ;;  %v3356_v47 = vpop.f32.mrb[65].mxu0 }
0x1d75   :  { %v2136_v42 = vpop.f32.mrb[66].mxu0 }
0x1d76   :  { %v2139_v43 = vadd.f32 %v4279_v9, %v2134_v32  ;;  %v3357_v44 = vpop.f32.mrb[67].mxu0 }
0x1d78   :  { %3626 = vtanh.f32 %v2139_v43  ;;  %v2952_v46 = vmul.f32 -1.442695, %v2139_v43 }
0x1d7a   :  { %3628 = vpow2.f32 %v2952_v46 }
0x1d82   :  { %v3627_v45 = vpop.eup %3626 }
0x1d83   :  { %2149 = vrot.lane.b32.xlu0 %v3627_v45, %s3735_s28 }
0x1d84   :  { %v3629_v51 = vpop.eup %3628 }
0x1d85   :  { %v2143_v52 = vadd.f32 1.0, %v3629_v51 }
0x1d87   :  { %3630 = vrcp.f32 %v2143_v52 }
0x1d91   :  { %v3631_v53 = vpop.eup %3630 }
0x1d92   :  { %v2147_v59 = vmul.f32 %v3631_v53, %v4291_v37 }
0x1df5   :  { %v2150_v54 = vpop.permute.xlu0 %2149 }
0x1df6   :  { %v2152_v56 = vmul.f32 %v3631_v53, %v2150_v54 }
0x1df8   :  { %2154 = vrot.lane.b32.xlu1 %v2152_v56, %s3735_s28 }
0x1e6a   :  { %v2155_v60 = vpop.permute.xlu1 %2154 }
0x1e6b   :  { %v4401_v62 = vadd.f32 %v2155_v60, %v2147_v59 }
0x1e6d   :  { %3632 = vtanh.f32 %v4401_v62 }
0x1e77   :  { %v3633_v63 = vpop.eup %3632 }
0x1e78   :  { %2160 = vrot.lane.b32.xlu0 %v3633_v63, %s3735_s28 }
0x1eea   :  { %v2161_v48 = vpop.permute.xlu0 %2160 }
0x1eeb   :  { %v2163_v16 = vmul.f32 %v3631_v53, %v2161_v48 }
0x1eed   :  { %v2164_v1 = vpack.c.bf16 %v2163_v16, %v2163_v16 }
0x1eef   :  { %2206 = vrot.lane.b32.xlu1 %v2164_v1, %s3736_s30 }
0x1f61   :  { %v2207_v2 = vpop.permute.xlu1 %2206 }
0x1f62   :  { %3371 = vmatmul.mubr.msk.bf16.vlgmr.msra.gmra.mrb[68].mxu0 %vm235_vm3, %v2207_v2 }
0x1f63   :  { %3383 = vmatpush3.bf16.msra.mxu0 %v4242_v50  ;;  %3386 = vmatprep.mubr.msk.bf16.mxu0 %vm3733_vm0, %v3732_v0 }
0x1f64   :  { %3384 = vmatprep.subr.bf16.mxu0 %v3732_v0 }
0x1f67   :  { %3385 = vmatpush3.bf16.msra.mxu0 %v4253_v58 }
0x1f68   :  { %3396 = vmatprep.subr.bf16.mxu0 %v3732_v0 }
0x1f6a   :  { %3387 = vmatmul.mubr.msk.bf16.vlgmr.msra.gmra.mrb[72].mxu0 %vm235_vm3, %v2207_v2 }
0x1f6b   :  { %3397 = vmatpush3.bf16.msra.mxu0 %v4297_v27  ;;  %3400 = vmatprep.mubr.msk.bf16.mxu0 %vm3733_vm0, %v3732_v0 }
0x1f6c   :  { %3398 = vmatprep.subr.bf16.mxu0 %v3732_v0 }
0x1f6f   :  { %3399 = vmatpush3.bf16.msra.mxu0 %v4304_v12 }
0x1f70   :  { %3412 = vmatprep.subr.bf16.mxu0 %v3732_v0 }
0x2035   :  { %v2245_v37 = vpop.f32.mrb[68].mxu0 }
0x2036   :  { %v2246_v4 = vadd.f32 %v2245_v37, %v2199_v49  ;;  %v3372_v5 = vpop.f32.mrb[69].mxu0 }
0x2037   :  { %v2248_v6 = vpop.f32.mrb[70].mxu0 }
0x2038   :  { %v2251_v7 = vadd.f32 %v4346_v61, %v2246_v4  ;;  %v3373_v8 = vpop.f32.mrb[71].mxu0 }
0x203a   :  { %3634 = vtanh.f32 %v2251_v7  ;;  %v2955_v18 = vmul.f32 -1.442695, %v2251_v7 }
0x203c   :  { %3636 = vpow2.f32 %v2955_v18 }
0x203d   :  { %v2360_v11 = vpop.f32.mrb[72].mxu0 }
0x203e   :  { %v3388_v13 = vpop.f32.mrb[73].mxu0 }
0x203f   :  { %v2363_v14 = vpop.f32.mrb[74].mxu0 }
0x2040   :  { %v3389_v15 = vpop.f32.mrb[75].mxu0 }
0x2044   :  { %v3635_v17 = vpop.eup %3634 }
0x2045   :  { %2261 = vrot.lane.b32.xlu0 %v3635_v17, %s3735_s28 }
0x2046   :  { %v3637_v3 = vpop.eup %3636 }
0x2047   :  { %v2255_v10 = vadd.f32 1.0, %v3637_v3 }
0x2049   :  { %3638 = vrcp.f32 %v2255_v10 }
0x2053   :  { %v3639_v20 = vpop.eup %3638 }
0x2054   :  { %v2259_v25 = vmul.f32 %v3639_v20, %v4352_v33 }
0x20b7   :  { %v2262_v22 = vpop.permute.xlu0 %2261 }
0x20b8   :  { %v2264_v24 = vmul.f32 %v3639_v20, %v2262_v22 }
0x20ba   :  { %2266 = vrot.lane.b32.xlu1 %v2264_v24, %s3735_s28 }
0x212c   :  { %v2267_v34 = vpop.permute.xlu1 %2266 }
0x212d   :  { %v4424_v23 = vadd.f32 %v2267_v34, %v2259_v25 }
0x212f   :  { %3640 = vtanh.f32 %v4424_v23 }
0x2139   :  { %v3641_v49 = vpop.eup %3640 }
0x213a   :  { %2272 = vrot.lane.b32.xlu0 %v3641_v49, %s3735_s28 }
0x21ac   :  { %v2273_v57 = vpop.permute.xlu0 %2272 }
0x21ad   :  { %v2275_v28 = vmul.f32 %v3639_v20, %v2273_v57 }
0x21af   :  { %v2276_v41 = vpack.c.bf16 %v2275_v28, %v2275_v28 }
0x21b1   :  { %2278 = vrot.lane.b32.xlu1 %v2276_v41, %s3736_s30 }
0x2223   :  { %v2279_v26 = vpop.permute.xlu1 %2278 }
0x2224   :  { %3379 = vmatmul.mubr.msk.bf16.vlgmr.msra.gmra.mrb[68].mxu1 %vm235_vm3, %v2279_v26  ;;  %3401 = vmatmul.mubr.msk.bf16.vlgmr.msra.gmra.mrb[76].mxu0 %vm235_vm3, %v2279_v26 }
0x2225   :  { %3391 = vmatpush3.bf16.msra.mxu1 %v4245_v55  ;;  %3392 = vmatprep.mubr.msk.bf16.mxu1 %vm3733_vm0, %v3732_v0 }
0x2226   :  { %3404 = vmatprep.subr.bf16.mxu1 %v3732_v0  ;;  %3413 = vmatpush3.bf16.msra.mxu0 %v4358_v19 }
0x2227   :  { %3414 = vmatprep.subr.bf16.mxu0 %v3732_v0  ;;  %3416 = vmatprep.mubr.msk.bf16.mxu0 %vm3733_vm0, %v3732_v0 }
0x222a   :  { %3415 = vmatpush3.bf16.msra.mxu0 %v4364_v39 }
0x222b   :  { %3428 = vmatprep.subr.bf16.mxu0 %v3732_v0 }
0x22f7   :  { %v2317_v33 = vpop.f32.mrb[68].mxu1  ;;  %v2469_v29 = vpop.f32.mrb[76].mxu0 }
0x22f8   :  { %v2318_v31 = vadd.f32 %v4386_v21, %v2317_v33  ;;  %v3380_v30 = vpop.f32.mrb[69].mxu1  ;;  %v3402_v35 = vpop.f32.mrb[77].mxu0 }
0x22f9   :  { %v2320_v36 = vpop.f32.mrb[70].mxu1  ;;  %v2472_v32 = vpop.f32.mrb[78].mxu0 }
0x22fa   :  { %2324 = vst.msk [vmem:[#allocation5 + $0x8] sm:$0xff] %vm141_vm2, %v2318_v31  ;;  %v2325_v47 = vpack.c.bf16 %v2318_v31, %v2318_v31  ;;  %v3381_v42 = vpop.f32.mrb[71].mxu1  ;;  %v3403_v43 = vpop.f32.mrb[79].mxu0 }
0x22fc   :  { %3393 = vmatmul.mubr.msk.bf16.vlgmr.msra.gmra.mrb[72].mxu1 %vm141_vm2, %v2325_v47 }
0x22fd   :  { %3405 = vmatpush3.bf16.msra.mxu1 %v4313_v38  ;;  %3408 = vmatprep.mubr.msk.bf16.mxu1 %vm3733_vm0, %v3732_v0 }
0x22fe   :  { %3406 = vmatprep.subr.bf16.mxu1 %v3732_v0 }
0x2301   :  { %3407 = vmatpush3.bf16.msra.mxu1 %v4319_v40 }
0x2302   :  { %3420 = vmatprep.subr.bf16.mxu1 %v3732_v0 }
0x23cf   :  { %v2403_v44 = vpop.f32.mrb[72].mxu1 }
0x23d0   :  { %v2404_v45 = vadd.f32 %v2403_v44, %v2360_v11  ;;  %v3394_v46 = vpop.f32.mrb[73].mxu1 }
0x23d1   :  { %v2406_v51 = vpop.f32.mrb[74].mxu1 }
0x23d2   :  { %v2409_v52 = vadd.f32 %v4279_v9, %v2404_v45  ;;  %v3395_v53 = vpop.f32.mrb[75].mxu1 }
0x23d4   :  { %3642 = vtanh.f32 %v2409_v52  ;;  %v2959_v56 = vmul.f32 -1.442695, %v2409_v52 }
0x23d6   :  { %3644 = vpow2.f32 %v2959_v56 }
0x23de   :  { %v3643_v54 = vpop.eup %3642 }
0x23df   :  { %2419 = vrot.lane.b32.xlu0 %v3643_v54, %s3735_s28 }
0x23e0   :  { %v3645_v59 = vpop.eup %3644 }
0x23e1   :  { %v2413_v60 = vadd.f32 1.0, %v3645_v59 }
0x23e3   :  { %3646 = vrcp.f32 %v2413_v60 }
0x23ed   :  { %v3647_v63 = vpop.eup %3646 }
0x23ee   :  { %v2417_v1 = vmul.f32 %v3647_v63, %v4401_v62 }
0x2451   :  { %v2420_v48 = vpop.permute.xlu0 %2419 }
0x2452   :  { %v2422_v16 = vmul.f32 %v3647_v63, %v2420_v48 }
0x2454   :  { %2424 = vrot.lane.b32.xlu1 %v2422_v16, %s3735_s28 }
0x24c6   :  { %v2425_v2 = vpop.permute.xlu1 %2424 }
0x24c7   :  { %v4454_v37 = vadd.f32 %v2425_v2, %v2417_v1 }
0x24c9   :  { %3648 = vtanh.f32 %v4454_v37 }
0x24d3   :  { %v3649_v4 = vpop.eup %3648 }
0x24d4   :  { %2430 = vrot.lane.b32.xlu0 %v3649_v4, %s3735_s28 }
0x2546   :  { %v2431_v5 = vpop.permute.xlu0 %2430 }
0x2547   :  { %v2433_v6 = vmul.f32 %v3647_v63, %v2431_v5 }
0x2549   :  { %v2434_v7 = vpack.c.bf16 %v2433_v6, %v2433_v6 }
0x254b   :  { %2476 = vrot.lane.b32.xlu1 %v2434_v7, %s3736_s30 }
0x25bd   :  { %v2477_v8 = vpop.permute.xlu1 %2476 }
0x25be   :  { %3409 = vmatmul.mubr.msk.bf16.vlgmr.msra.gmra.mrb[76].mxu1 %vm235_vm3, %v2477_v8 }
0x25bf   :  { %3421 = vmatpush3.bf16.msra.mxu1 %v4242_v50  ;;  %3424 = vmatprep.mubr.msk.bf16.mxu1 %vm3733_vm0, %v3732_v0 }
0x25c0   :  { %3422 = vmatprep.subr.bf16.mxu1 %v3732_v0 }
0x25c3   :  { %3423 = vmatpush3.bf16.msra.mxu1 %v4253_v58 }
0x25c4   :  { %3434 = vmatprep.subr.bf16.mxu1 %v3732_v0 }
0x25c6   :  { %3425 = vmatmul.mubr.msk.bf16.vlgmr.msra.gmra.mrb[80].mxu1 %vm235_vm3, %v2477_v8 }
0x25c7   :  { %3435 = vmatpush3.bf16.msra.mxu1 %v4297_v27  ;;  %3438 = vmatprep.mubr.msk.bf16.mxu1 %vm3733_vm0, %v3732_v0 }
0x25c8   :  { %3436 = vmatprep.subr.bf16.mxu1 %v3732_v0 }
0x25cb   :  { %3437 = vmatpush3.bf16.msra.mxu1 %v4304_v12 }
0x25cc   :  { %3450 = vmatprep.subr.bf16.mxu1 %v3732_v0 }
0x2691   :  { %v2515_v50 = vpop.f32.mrb[76].mxu1 }
0x2692   :  { %v2516_v62 = vadd.f32 %v2515_v50, %v2469_v29  ;;  %v3410_v11 = vpop.f32.mrb[77].mxu1 }
0x2693   :  { %v2518_v13 = vpop.f32.mrb[78].mxu1 }
0x2694   :  { %v2521_v58 = vadd.f32 %v4346_v61, %v2516_v62  ;;  %v3411_v14 = vpop.f32.mrb[79].mxu1 }
0x2696   :  { %3650 = vtanh.f32 %v2521_v58  ;;  %v2962_v10 = vmul.f32 -1.442695, %v2521_v58 }
0x2698   :  { %3652 = vpow2.f32 %v2962_v10 }
0x2699   :  { %v2630_v15 = vpop.f32.mrb[80].mxu1 }
0x269a   :  { %v3426_v17 = vpop.f32.mrb[81].mxu1 }
0x269b   :  { %v2633_v27 = vpop.f32.mrb[82].mxu1 }
0x269c   :  { %v3427_v18 = vpop.f32.mrb[83].mxu1 }
0x26a0   :  { %v3651_v3 = vpop.eup %3650 }
0x26a1   :  { %2531 = vrot.lane.b32.xlu0 %v3651_v3, %s3735_s28 }
0x26a2   :  { %v3653_v12 = vpop.eup %3652 }
0x26a3   :  { %v2525_v20 = vadd.f32 1.0, %v3653_v12 }
0x26a5   :  { %3654 = vrcp.f32 %v2525_v20 }
0x26af   :  { %v3655_v22 = vpop.eup %3654 }
0x26b0   :  { %v2529_v34 = vmul.f32 %v3655_v22, %v4424_v23 }
0x2713   :  { %v2532_v24 = vpop.permute.xlu0 %2531 }
0x2714   :  { %v2534_v25 = vmul.f32 %v3655_v22, %v2532_v24 }
0x2716   :  { %2536 = vrot.lane.b32.xlu1 %v2534_v25, %s3735_s28 }
0x2788   :  { %v2537_v49 = vpop.permute.xlu1 %2536 }
0x2789   :  { %v4477_v57 = vadd.f32 %v2537_v49, %v2529_v34 }
0x278b   :  { %3656 = vtanh.f32 %v4477_v57 }
0x2795   :  { %v3657_v28 = vpop.eup %3656 }
0x2796   :  { %2542 = vrot.lane.b32.xlu0 %v3657_v28, %s3735_s28 }
0x2808   :  { %v2543_v41 = vpop.permute.xlu0 %2542 }
0x2809   :  { %v2545_v26 = vmul.f32 %v3655_v22, %v2543_v41 }
0x280b   :  { %v2546_v33 = vpack.c.bf16 %v2545_v26, %v2545_v26 }
0x280d   :  { %2548 = vrot.lane.b32.xlu1 %v2546_v33, %s3736_s30 }
0x287f   :  { %v2549_v29 = vpop.permute.xlu1 %2548 }
0x2880   :  { %3417 = vmatmul.mubr.msk.bf16.vlgmr.msra.gmra.mrb[80].mxu0 %vm235_vm3, %v2549_v29  ;;  %3439 = vmatmul.mubr.msk.bf16.vlgmr.msra.gmra.mrb[84].mxu1 %vm235_vm3, %v2549_v29 }
0x2881   :  { %3429 = vmatpush3.bf16.msra.mxu0 %v4245_v55  ;;  %3430 = vmatprep.mubr.msk.bf16.mxu0 %vm3733_vm0, %v3732_v0 }
0x2882   :  { %3442 = vmatprep.subr.bf16.mxu0 %v3732_v0  ;;  %3451 = vmatpush3.bf16.msra.mxu1 %v4358_v19 }
0x2883   :  { %3452 = vmatprep.subr.bf16.mxu1 %v3732_v0  ;;  %3454 = vmatprep.mubr.msk.bf16.mxu1 %vm3733_vm0, %v3732_v0 }
0x2886   :  { %3453 = vmatpush3.bf16.msra.mxu1 %v4364_v39 }
0x2953   :  { %v2587_v23 = vpop.f32.mrb[80].mxu0  ;;  %v2739_v31 = vpop.f32.mrb[84].mxu1 }
0x2954   :  { %v2588_v30 = vadd.f32 %v4386_v21, %v2587_v23  ;;  %v3418_v35 = vpop.f32.mrb[81].mxu0  ;;  %v3440_v55 = vpop.f32.mrb[85].mxu1 }
0x2955   :  { %v2590_v36 = vpop.f32.mrb[82].mxu0  ;;  %v2742_v32 = vpop.f32.mrb[86].mxu1 }
0x2956   :  { %2594 = vst.msk [vmem:[#allocation5 + $0x10] sm:$0xff] %vm141_vm2, %v2588_v30  ;;  %v2595_v47 = vpack.c.bf16 %v2588_v30, %v2588_v30  ;;  %v3419_v42 = vpop.f32.mrb[83].mxu0  ;;  %v3441_v19 = vpop.f32.mrb[87].mxu1 }
0x2958   :  { %3431 = vmatmul.mubr.msk.bf16.vlgmr.msra.gmra.mrb[84].mxu0 %vm141_vm2, %v2595_v47 }
0x2959   :  { %3443 = vmatpush3.bf16.msra.mxu0 %v4313_v38  ;;  %3446 = vmatprep.mubr.msk.bf16.mxu0 %vm3733_vm0, %v3732_v0 }
0x295a   :  { %3444 = vmatprep.subr.bf16.mxu0 %v3732_v0 }
0x295d   :  { %3445 = vmatpush3.bf16.msra.mxu0 %v4319_v40 }
0x2a2b   :  { %v2673_v39 = vpop.f32.mrb[84].mxu0 }
0x2a2c   :  { %v2674_v43 = vadd.f32 %v2673_v39, %v2630_v15  ;;  %v3432_v44 = vpop.f32.mrb[85].mxu0 }
0x2a2d   :  { %v2676_v45 = vpop.f32.mrb[86].mxu0 }
0x2a2e   :  { %v2679_v46 = vadd.f32 %v4279_v9, %v2674_v43  ;;  %v3433_v51 = vpop.f32.mrb[87].mxu0 }
0x2a30   :  { %3658 = vtanh.f32 %v2679_v46  ;;  %v2966_v53 = vmul.f32 -1.442695, %v2679_v46 }
0x2a32   :  { %3660 = vpow2.f32 %v2966_v53 }
0x2a3a   :  { %v3659_v52 = vpop.eup %3658 }
0x2a3b   :  { %2689 = vrot.lane.b32.xlu0 %v3659_v52, %s3735_s28 }
0x2a3c   :  { %v3661_v38 = vpop.eup %3660 }
0x2a3d   :  { %v2683_v54 = vadd.f32 1.0, %v3661_v38 }
0x2a3f   :  { %3662 = vrcp.f32 %v2683_v54 }
0x2a49   :  { %v3663_v56 = vpop.eup %3662 }
0x2a4a   :  { %v2687_v40 = vmul.f32 %v3663_v56, %v4454_v37 }
0x2aad   :  { %v2690_v0 = vpop.permute.xlu0 %2689 }
0x2aae   :  { %v2692_v59 = vmul.f32 %v3663_v56, %v2690_v0 }
0x2ab0   :  { %2694 = vrot.lane.b32.xlu1 %v2692_v59, %s3735_s28 }
0x2b22   :  { %v2695_v60 = vpop.permute.xlu1 %2694 }
0x2b23   :  { %v2697_v63 = vadd.f32 %v2695_v60, %v2687_v40 }
0x2b25   :  { %3664 = vtanh.f32 %v2697_v63 }
0x2b2f   :  { %v3665_v9 = vpop.eup %3664 }
0x2b30   :  { %2700 = vrot.lane.b32.xlu0 %v3665_v9, %s3735_s28 }
0x2ba2   :  { %v2701_v48 = vpop.permute.xlu0 %2700 }
0x2ba3   :  { %v2703_v16 = vmul.f32 %v3663_v56, %v2701_v48 }
0x2ba5   :  { %v2704_v1 = vpack.c.bf16 %v2703_v16, %v2703_v16 }
0x2ba7   :  { %2746 = vrot.lane.b32.xlu1 %v2704_v1, %s3736_s30 }
0x2c19   :  { %v2747_v2 = vpop.permute.xlu1 %2746 }
0x2c1a   :  { %3447 = vmatmul.mubr.msk.bf16.vlgmr.msra.gmra.mrb[88].mxu0 %vm235_vm3, %v2747_v2 }
0x2ced   :  { %v2785_v4 = vpop.f32.mrb[88].mxu0 }
0x2cee   :  { %v2786_v5 = vadd.f32 %v2785_v4, %v2739_v31  ;;  %v3448_v6 = vpop.f32.mrb[89].mxu0 }
0x2cef   :  { %v2788_v7 = vpop.f32.mrb[90].mxu0 }
0x2cf0   :  { %v2791_v37 = vadd.f32 %v4346_v61, %v2786_v5  ;;  %v3449_v8 = vpop.f32.mrb[91].mxu0 }
0x2cf2   :  { %3666 = vtanh.f32 %v2791_v37  ;;  %v2969_v62 = vmul.f32 -1.442695, %v2791_v37 }
0x2cf4   :  { %3668 = vpow2.f32 %v2969_v62 }
0x2cfc   :  { %v3667_v50 = vpop.eup %3666 }
0x2cfd   :  { %2801 = vrot.lane.b32.xlu0 %v3667_v50, %s3735_s28 }
0x2cfe   :  { %v3669_v11 = vpop.eup %3668 }
0x2cff   :  { %v2795_v13 = vadd.f32 1.0, %v3669_v11 }
0x2d01   :  { %3670 = vrcp.f32 %v2795_v13 }
0x2d0b   :  { %v3671_v58 = vpop.eup %3670 }
0x2d0c   :  { %v2799_v17 = vmul.f32 %v3671_v58, %v4477_v57 }
0x2d6f   :  { %v2802_v14 = vpop.permute.xlu0 %2801 }
0x2d70   :  { %v2804_v15 = vmul.f32 %v3671_v58, %v2802_v14 }
0x2d72   :  { %2806 = vrot.lane.b32.xlu1 %v2804_v15, %s3735_s28 }
0x2de4   :  { %v2807_v27 = vpop.permute.xlu1 %2806 }
0x2de5   :  { %v2809_v18 = vadd.f32 %v2807_v27, %v2799_v17 }
0x2de7   :  { %3672 = vtanh.f32 %v2809_v18 }
0x2df1   :  { %v3673_v61 = vpop.eup %3672 }
0x2df2   :  { %2812 = vrot.lane.b32.xlu0 %v3673_v61, %s3735_s28  ;;  %s3705_s28 = scalar_lea.vmem %s2871_s4, 512 }
0x2df3   :  { %p3706_p8 = scmp.ne.s32.totalorder %s2871_s4, %s3705_s28  ;;  %p3711_p10 = scmp.lt.s32.totalorder %s3705_s28, %s3705_s28 }
0x2df5   :  { %p3712_p11 = por %p3711_p10, %p3710_p9 }
0x2df7   :  { %p3713_p12 = pnand %p3712_p11, %p3706_p8 }
0x2e64   :  { %v2813_v3 = vpop.permute.xlu0 %2812 }
0x2e65   :  { %v2815_v10 = vmul.f32 %v3671_v58, %v2813_v3 }
0x2e67   :  { %v2816_v12 = vpack.c.bf16 %v2815_v10, %v2815_v10 }
0x2e69   :  { %2818 = vrot.lane.b32.xlu1 %v2816_v12, %s3736_s30 }
0x2edb   :  { %v2819_v20 = vpop.permute.xlu1 %2818 }
0x2edc   :  { %3455 = vmatmul.mubr.msk.bf16.vlgmr.msra.gmra.mrb[88].mxu1 %vm235_vm3, %v2819_v20 }
0x2faf   :  { %v2857_v22 = vpop.f32.mrb[88].mxu1 }
0x2fb0   :  { %v2858_v24 = vadd.f32 %v4386_v21, %v2857_v22  ;;  %v3456_v25 = vpop.f32.mrb[89].mxu1 }
0x2fb1   :  { %v2860_v34 = vpop.f32.mrb[90].mxu1 }
0x2fb2   :  { %2864 = vst.msk [vmem:[#allocation5 + $0x18] sm:$0xff] %vm141_vm2, %v2858_v24  ;;  %v3457_v49 = vpop.f32.mrb[91].mxu1 }
0x2fb3   :  { %3716 = shalt.err (!%p3713_p12)
}
0x2fb4   :  { %s3717_s1 = scalar_lea.hbm %s4544_s15, 512 }
0x2fb5   :  { %p3718_p13 = scmp.ne.s32.totalorder %s4544_s15, %s3717_s1  ;;  %p3721_p0 = scmp.lt.u32.totalorder %s3717_s1, %s4544_s15 }
0x2fb7   :  { %p3723_p1 = pnand %p3721_p0, %p3718_p13 }
0x2fb9   :  { %3726 = shalt.err (!%p3723_p1)
}
0x2fba   :  { %s3738_s0 = smov 128   ;;  %s3739_s8 = smov 8  }
0x2fbb   :  { %2876 = dma.vmem_to_hbm [thread:$0]  %s2871_s4, 512, %s4544_s15, [#allocation4], %s3738_s0, %s3738_s0, %s3739_s8  }
0x2fbc   :  { %3729 = dma.done.wait [#allocation4], 512  }
0x2fbd   :  { %3730 = vsyncadd [#allocation4], 4294966784 }
0x2fbe   :  { %2880 = vsyncpa [#allocation3], 1 }
0x2fbf   :  { %2881 = vsyncpa [#allocation4], 1 }

</bundles_post_ra>
